<compile_context>
chip_gen: v7x
topology: tpu7x:2x2x1
jax: 0.10.0
libtpu: 0.0.40
codegen_flags: <defaults>
</compile_context>

<pallas_src>
import functools
import math

import jax
import jax.numpy as jnp
from jax.experimental import pallas as pl
from jax.experimental.pallas import tpu as pltpu

SQ2PI = 0.79788456
D_IN = 28 * 28
D_OUT = 10
LANE = 128
NEG_BIG = -1e30   # finite "minus infinity": 0 * NEG_BIG == 0, exp(NEG_BIG) == 0


def _round_up(n, m):
    return ((n + m - 1) // m) * m


def _pad2(a, rows, cols, val=0.0):
    return jnp.pad(a, ((0, rows - a.shape[0]), (0, cols - a.shape[1])),
                   constant_values=val)


# -----------------------------------------------------------------------------
# Kernel: one batch tile per grid step.
# -----------------------------------------------------------------------------
def _ebp_kernel(x_ref, y_ref,
                m0_ref, m1_ref, m2_ref, m3_ref, mlast_ref,
                msq1_ref, msq2_ref, msq3_ref,
                th0_ref, th1_ref, th2_ref, th3_ref, thlast_ref,
                inv1_ref, c2_ref, c3_ref, c4_ref,
                hlast_ref, logp_ref, x1_ref, x2_ref, x3_ref, x4_ref,
                stats_ref, *, m_true):
    x = x_ref[...]                                   # (TM, 784) bf16
    y = y_ref[...]                                   # (TM, 1)   i32
    tm = x.shape[0]

    # TODO(synk): F.dropout is training-mode stochastic; implemented as the
    # eval-mode identity here.

    # ---- input layer: diagsig1 is batch-independent, pre-folded into inv1 ----
    h1 = jnp.dot(x, m0_ref[...], preferred_element_type=jnp.float32) + th0_ref[...]
    x1 = jnp.tanh(h1 * inv1_ref[...])                # inv1 = sq2pi / sqrt(diag1)
    d1 = 1.0 - x1 * x1                               # diagonal of xcov_1

    # ---- EBP hidden layer: xcov is diagonal, so diag(m^T xcov m) = d_prev @ m^2
    def ebp_layer(xbar, d_prev, m_ref, msq_ref, th_ref, c_ref):
        hbar = (jnp.dot(xbar.astype(jnp.bfloat16), m_ref[...],
                        preferred_element_type=jnp.float32) + th_ref[...])
        diagsig = (jnp.dot(d_prev.astype(jnp.bfloat16), msq_ref[...],
                           preferred_element_type=jnp.float32) + c_ref[...])
        return jnp.tanh((SQ2PI * hbar) * jax.lax.rsqrt(diagsig))

    x2 = ebp_layer(x1, d1, m1_ref, msq1_ref, th1_ref, c2_ref)
    d2 = 1.0 - x2 * x2
    x3 = ebp_layer(x2, d2, m2_ref, msq2_ref, th2_ref, c3_ref)
    # Module quirk preserved: the 4th layer reuses xcov_2 (d2), not xcov_3.
    x4 = ebp_layer(x3, d2, m3_ref, msq3_ref, th3_ref, c4_ref)

    # ---- output layer: thlast carries NEG_BIG in padded lanes, so padded
    # logits never win the max, never contribute to softmax, never argmax.
    hlast = (jnp.dot(x4.astype(jnp.bfloat16), mlast_ref[...],
                     preferred_element_type=jnp.float32) + thlast_ref[...])
    kp = hlast.shape[1]

    mx = jnp.max(hlast, axis=1, keepdims=True)
    sh = hlast - mx
    logp = sh - jnp.log(jnp.sum(jnp.exp(sh), axis=1, keepdims=True))

    # ---- lane-dense writebacks ----
    x1_ref[...] = x1
    x2_ref[...] = x2
    x3_ref[...] = x3
    x4_ref[...] = x4
    hlast_ref[...] = hlast
    logp_ref[...] = logp

    # ---- per-tile partial NLL sum and correct count (padded rows masked) ----
    row = (pl.program_id(0) * tm
           + jax.lax.broadcasted_iota(jnp.int32, (tm, 1), 0))
    valid = (row < m_true).astype(jnp.float32)                    # (TM, 1)

    col = jax.lax.broadcasted_iota(jnp.int32, (tm, kp), 1)
    onehot = (col == y).astype(jnp.float32)                       # targets < 10
    nll = -jnp.sum(logp * onehot, axis=1, keepdims=True)          # (TM, 1)
    loss_part = jnp.sum(nll * valid)

    is_max = hlast >= mx
    pred = jnp.min(jnp.where(is_max, col, kp), axis=1, keepdims=True)  # argmax
    cnt_part = jnp.sum((pred == y).astype(jnp.float32) * valid)

    sub = jax.lax.broadcasted_iota(jnp.int32, (8, 128), 0)
    lane = jax.lax.broadcasted_iota(jnp.int32, (8, 128), 1)
    stats_ref[...] = jnp.where(
        (sub == 0) & (lane == 0), loss_part,
        jnp.where((sub == 0) & (lane == 1), cnt_part, 0.0))


# -----------------------------------------------------------------------------
# Parameters (synthetic init mirroring the module's shapes).
# -----------------------------------------------------------------------------
def init_params(key, hidden, scale):
    ks = jax.random.split(key, 6)

    def u(k, shape):
        stdv = 1.0 / math.sqrt(shape[1])
        return scale * jax.random.uniform(k, shape, jnp.float32, -stdv, stdv)

    return dict(
        w0=u(ks[0], (D_IN, hidden)),
        w1=u(ks[1], (hidden, hidden)),
        w2=u(ks[2], (hidden, hidden)),
        w3=u(ks[3], (hidden, hidden)),
        w4=u(ks[4], (hidden, hidden)),     # dead in forward (module parity only)
        wlast=u(ks[5], (hidden, D_OUT)),
        th0=jnp.zeros((1, hidden), jnp.float32),
        th1=jnp.zeros((1, hidden), jnp.float32),
        th2=jnp.zeros((1, hidden), jnp.float32),
        th3=jnp.zeros((1, hidden), jnp.float32),
        th4=jnp.zeros((1, hidden), jnp.float32),   # dead in forward
        thlast=jnp.zeros((1, D_OUT), jnp.float32),
    )


# -----------------------------------------------------------------------------
# Wrapper
# -----------------------------------------------------------------------------
def ebp_binary_net_forward(x, target, params, hidden, *, tile_m=512):
    x2d = x.reshape(-1, D_IN).astype(jnp.float32)          # (M, 784)
    m_true = x2d.shape[0]
    hp = _round_up(hidden, LANE)                            # lane-dense hidden
    kp = _round_up(D_OUT, LANE)                             # lane-dense logits

    m8 = _round_up(m_true, 8)
    tile_m = min(tile_m, m8)
    num_tiles = (m8 + tile_m - 1) // tile_m
    m_pad = num_tiles * tile_m

    # ---- hoisted weight transform + weight-only column sums (once per call) --
    def msig(w):
        return jnp.tanh(0.5 * w)            # == 2*sigmoid(w) - 1

    m0 = msig(params["w0"])
    m1 = msig(params["w1"])
    m2 = msig(params["w2"])
    m3 = msig(params["w3"])
    mlast = msig(params["wlast"])
    # NOTE: w4/th4 (and m4, sigmalast, diagsiglast) are dead in the module's
    # forward; they are NOT passed to the kernel.

    diag1 = jnp.sum(1.0 - m0 * m0, axis=0, keepdims=True)   # (1, H), > 0
    inv1 = SQ2PI / jnp.sqrt(diag1)
    c2 = jnp.sum(1.0 - m1 * m1, axis=0, keepdims=True)
    c3 = jnp.sum(1.0 - m2 * m2, axis=0, keepdims=True)
    c4 = jnp.sum(1.0 - m3 * m3, axis=0, keepdims=True)

    bf16 = jnp.bfloat16
    m0b = _pad2(m0, D_IN, hp).astype(bf16)
    m1b = _pad2(m1, hp, hp).astype(bf16)
    m2b = _pad2(m2, hp, hp).astype(bf16)
    m3b = _pad2(m3, hp, hp).astype(bf16)
    mlastb = _pad2(mlast, hp, kp).astype(bf16)
    msq1 = _pad2(m1 * m1, hp, hp).astype(bf16)
    msq2 = _pad2(m2 * m2, hp, hp).astype(bf16)
    msq3 = _pad2(m3 * m3, hp, hp).astype(bf16)

    th0 = _pad2(params["th0"], 1, hp)
    th1 = _pad2(params["th1"], 1, hp)
    th2 = _pad2(params["th2"], 1, hp)
    th3 = _pad2(params["th3"], 1, hp)
    thlastm = _pad2(params["thlast"], 1, kp, val=NEG_BIG)    # mask padded lanes
    inv1p = _pad2(inv1, 1, hp, val=1.0)
    c2p = _pad2(c2, 1, hp, val=1.0)
    c3p = _pad2(c3, 1, hp, val=1.0)
    c4p = _pad2(c4, 1, hp, val=1.0)

    x_pad = _pad2(x2d, m_pad, D_IN).astype(bf16)             # bf16 MXU operand
    y_pad = jnp.pad(target.reshape(-1, 1).astype(jnp.int32),
                    ((0, m_pad - m_true), (0, 0)))

    vmem = pltpu.MemorySpace.VMEM

    def wspec(shape):                      # weights: resident across the grid
        return pl.BlockSpec(shape, lambda i: (0, 0), memory_space=vmem)

    def rowspec(cols):                     # batch-tiled operands
        return pl.BlockSpec((tile_m, cols), lambda i: (i, 0), memory_space=vmem)

    in_specs = [
        rowspec(D_IN),                                        # x
        rowspec(1),                                           # y
        wspec((D_IN, hp)),                                    # m0
        wspec((hp, hp)), wspec((hp, hp)), wspec((hp, hp)),    # m1..m3
        wspec((hp, kp)),                                      # mlast
        wspec((hp, hp)), wspec((hp, hp)), wspec((hp, hp)),    # msq1..msq3
        wspec((1, hp)), wspec((1, hp)), wspec((1, hp)), wspec((1, hp)),  # th0..3
        wspec((1, kp)),                                       # thlast (masked)
        wspec((1, hp)), wspec((1, hp)), wspec((1, hp)), wspec((1, hp)),  # inv1,c2..c4
    ]
    out_specs = [
        rowspec(kp), rowspec(kp),                             # hlast, logp
        rowspec(hp), rowspec(hp), rowspec(hp), rowspec(hp),   # x1..x4
        pl.BlockSpec((8, 128), lambda i: (i, 0), memory_space=vmem),  # stats
    ]
    out_shape = (
        jax.ShapeDtypeStruct((m_pad, kp), jnp.float32),
        jax.ShapeDtypeStruct((m_pad, kp), jnp.float32),
        jax.ShapeDtypeStruct((m_pad, hp), jnp.float32),
        jax.ShapeDtypeStruct((m_pad, hp), jnp.float32),
        jax.ShapeDtypeStruct((m_pad, hp), jnp.float32),
        jax.ShapeDtypeStruct((m_pad, hp), jnp.float32),
        jax.ShapeDtypeStruct((num_tiles * 8, 128), jnp.float32),
    )

    flops = 2 * m_pad * (D_IN * hp + 6 * hp * hp + hp * kp)
    transcendentals = m_pad * (7 * hp + kp)
    bytes_in = (x_pad.size * 2 + y_pad.size * 4
                + 2 * (m0b.size + m1b.size + m2b.size + m3b.size + mlastb.size
                       + msq1.size + msq2.size + msq3.size)
                + 4 * (th0.size + th1.size + th2.size + th3.size + thlastm.size
                       + inv1p.size + c2p.size + c3p.size + c4p.size))
    bytes_out = 4 * (2 * m_pad * kp + 4 * m_pad * hp + num_tiles * 8 * 128)

    fn = pl.pallas_call(
        functools.partial(_ebp_kernel, m_true=m_true),
        out_shape=out_shape,
        grid_spec=pltpu.PrefetchScalarGridSpec(
            num_scalar_prefetch=0,
            grid=(num_tiles,),
            in_specs=in_specs,
            out_specs=out_specs,
        ),
        compiler_params=pltpu.CompilerParams(
            dimension_semantics=("parallel",),
            vmem_limit_bytes=48 * 1024 * 1024,
        ),
        cost_estimate=pl.CostEstimate(
            flops=flops, transcendentals=transcendentals,
            bytes_accessed=bytes_in + bytes_out),
    )

    (hlast_p, logp_p, x1p, x2p, x3p, x4p, stats) = fn(
        x_pad, y_pad, m0b, m1b, m2b, m3b, mlastb, msq1, msq2, msq3,
        th0, th1, th2, th3, thlastm, inv1p, c2p, c3p, c4p)

    # Slice padded lanes / rows back off.
    hlastbar = hlast_p[:m_true, :D_OUT]
    logprobs = logp_p[:m_true, :D_OUT]
    x1bar = x1p[:m_true, :hidden]
    x2bar = x2p[:m_true, :hidden]
    x3bar = x3p[:m_true, :hidden]
    x4bar = x4p[:m_true, :hidden]

    # Reduce per-tile partials (wrapper-side so the grid axis stays parallel).
    loss = jnp.sum(stats[0::8, 0]) / m_true
    frac = jnp.sum(stats[0::8, 1]) / m_true

    # Diagonal covariance tensors (pure broadcast glue, no compute).
    eye = jnp.eye(hidden, dtype=jnp.float32)[None, :, :]
    xcov_1 = eye * (1.0 - x1bar * x1bar)[:, None, :]
    xcov_2 = eye * (1.0 - x2bar * x2bar)[:, None, :]
    xcov_3 = eye * (1.0 - x3bar * x3bar)[:, None, :]
    xcov_4 = eye * (1.0 - x4bar * x4bar)[:, None, :]

    return ((hlastbar, logprobs),
            loss,
            frac,
            (x1bar, x2bar, x3bar, x4bar),
            (xcov_1, xcov_2, xcov_3, xcov_4))


if __name__ == "__main__":
    M = 8          # batch
    H1 = 32        # hidden
    SCALE = 1.0
    DROP_PRB = 0.2  # stored by the module; unused in eval-mode forward

    key = jax.random.PRNGKey(0)
    k_x, k_y, k_p = jax.random.split(key, 3)

    x = jax.random.normal(k_x, (M, 1, 28, 28), jnp.float32)          # MNIST-like
    target = jax.random.randint(k_y, (M,), 0, D_OUT, jnp.int32)       # labels
    params = init_params(k_p, H1, SCALE)

    result = ebp_binary_net_forward(x, target, params, H1)
    jax.block_until_ready(result)

    (hlastbar, logprobs), loss, frac, xbars, xcovs = result
    assert hlastbar.shape == (M, D_OUT) and logprobs.shape == (M, D_OUT)
    assert all(xb.shape == (M, H1) for xb in xbars)
    assert all(xc.shape == (M, H1, H1) for xc in xcovs)
    assert bool(jnp.isfinite(loss)) and 0.0 <= float(frac) <= 1.0
    print("KERNEL_OK")
</pallas_src>

<mosaic_0001>
module attributes {stable_mosaic.version = 11 : i64} {
  func.func @_ebp_kernel(%arg0: i32, %arg1: memref<8x784xbf16, #tpu.memory_space<vmem>>, %arg2: memref<8x1xi32, #tpu.memory_space<vmem>>, %arg3: memref<784x128xbf16, #tpu.memory_space<vmem>>, %arg4: memref<128x128xbf16, #tpu.memory_space<vmem>>, %arg5: memref<128x128xbf16, #tpu.memory_space<vmem>>, %arg6: memref<128x128xbf16, #tpu.memory_space<vmem>>, %arg7: memref<128x128xbf16, #tpu.memory_space<vmem>>, %arg8: memref<128x128xbf16, #tpu.memory_space<vmem>>, %arg9: memref<128x128xbf16, #tpu.memory_space<vmem>>, %arg10: memref<128x128xbf16, #tpu.memory_space<vmem>>, %arg11: memref<1x128xf32, #tpu.memory_space<vmem>>, %arg12: memref<1x128xf32, #tpu.memory_space<vmem>>, %arg13: memref<1x128xf32, #tpu.memory_space<vmem>>, %arg14: memref<1x128xf32, #tpu.memory_space<vmem>>, %arg15: memref<1x128xf32, #tpu.memory_space<vmem>>, %arg16: memref<1x128xf32, #tpu.memory_space<vmem>>, %arg17: memref<1x128xf32, #tpu.memory_space<vmem>>, %arg18: memref<1x128xf32, #tpu.memory_space<vmem>>, %arg19: memref<1x128xf32, #tpu.memory_space<vmem>>, %arg20: memref<8x128xf32, #tpu.memory_space<vmem>>, %arg21: memref<8x128xf32, #tpu.memory_space<vmem>>, %arg22: memref<8x128xf32, #tpu.memory_space<vmem>>, %arg23: memref<8x128xf32, #tpu.memory_space<vmem>>, %arg24: memref<8x128xf32, #tpu.memory_space<vmem>>, %arg25: memref<8x128xf32, #tpu.memory_space<vmem>>, %arg26: memref<8x128xf32, #tpu.memory_space<vmem>>) attributes {dimension_semantics = [#tpu.dimension_semantics<parallel>], iteration_bounds = array<i64: 1>, scalar_prefetch = 0 : i64, scratch_operands = 0 : i64, tpu.core_type = #tpu.core_type<tc>, window_params = [{transform_indices = @transform_0, window_bounds = array<i64: 8, 784>}, {transform_indices = @transform_1, window_bounds = array<i64: 8, 1>}, {pipeline_mode = #tpu.pipeline_mode<synchronous>, transform_indices = @transform_2, window_bounds = array<i64: 784, 128>}, {pipeline_mode = #tpu.pipeline_mode<synchronous>, transform_indices = @transform_3, window_bounds = array<i64: 128, 128>}, {pipeline_mode = #tpu.pipeline_mode<synchronous>, transform_indices = @transform_4, window_bounds = array<i64: 128, 128>}, {pipeline_mode = #tpu.pipeline_mode<synchronous>, transform_indices = @transform_5, window_bounds = array<i64: 128, 128>}, {pipeline_mode = #tpu.pipeline_mode<synchronous>, transform_indices = @transform_6, window_bounds = array<i64: 128, 128>}, {pipeline_mode = #tpu.pipeline_mode<synchronous>, transform_indices = @transform_7, window_bounds = array<i64: 128, 128>}, {pipeline_mode = #tpu.pipeline_mode<synchronous>, transform_indices = @transform_8, window_bounds = array<i64: 128, 128>}, {pipeline_mode = #tpu.pipeline_mode<synchronous>, transform_indices = @transform_9, window_bounds = array<i64: 128, 128>}, {pipeline_mode = #tpu.pipeline_mode<synchronous>, transform_indices = @transform_10, window_bounds = array<i64: 1, 128>}, {pipeline_mode = #tpu.pipeline_mode<synchronous>, transform_indices = @transform_11, window_bounds = array<i64: 1, 128>}, {pipeline_mode = #tpu.pipeline_mode<synchronous>, transform_indices = @transform_12, window_bounds = array<i64: 1, 128>}, {pipeline_mode = #tpu.pipeline_mode<synchronous>, transform_indices = @transform_13, window_bounds = array<i64: 1, 128>}, {pipeline_mode = #tpu.pipeline_mode<synchronous>, transform_indices = @transform_14, window_bounds = array<i64: 1, 128>}, {pipeline_mode = #tpu.pipeline_mode<synchronous>, transform_indices = @transform_15, window_bounds = array<i64: 1, 128>}, {pipeline_mode = #tpu.pipeline_mode<synchronous>, transform_indices = @transform_16, window_bounds = array<i64: 1, 128>}, {pipeline_mode = #tpu.pipeline_mode<synchronous>, transform_indices = @transform_17, window_bounds = array<i64: 1, 128>}, {pipeline_mode = #tpu.pipeline_mode<synchronous>, transform_indices = @transform_18, window_bounds = array<i64: 1, 128>}, {transform_indices = @transform_19, window_bounds = array<i64: 8, 128>}, {transform_indices = @transform_20, window_bounds = array<i64: 8, 128>}, {transform_indices = @transform_21, window_bounds = array<i64: 8, 128>}, {transform_indices = @transform_22, window_bounds = array<i64: 8, 128>}, {transform_indices = @transform_23, window_bounds = array<i64: 8, 128>}, {transform_indices = @transform_24, window_bounds = array<i64: 8, 128>}, {transform_indices = @transform_25, window_bounds = array<i64: 8, 128>}]} {
    %c0 = arith.constant 0 : index
    %c0_0 = arith.constant 0 : index
    %0 = vector.load %arg1[%c0, %c0_0] : memref<8x784xbf16, #tpu.memory_space<vmem>>, vector<8x784xbf16>
    %c0_1 = arith.constant 0 : index
    %c0_2 = arith.constant 0 : index
    %1 = vector.load %arg2[%c0_1, %c0_2] : memref<8x1xi32, #tpu.memory_space<vmem>>, vector<8x1xi32>
    %c0_3 = arith.constant 0 : index
    %c0_4 = arith.constant 0 : index
    %2 = vector.load %arg3[%c0_3, %c0_4] : memref<784x128xbf16, #tpu.memory_space<vmem>>, vector<784x128xbf16>
    %cst = arith.constant dense<0.000000e+00> : vector<8x128xf32>
    %3 = tpu.matmul %0, %2, %cst {dimension_numbers = #tpu.dot_dimension_numbers<[1], [0], [0], [1], [0, 0, 1, 1], [], []>} : vector<8x784xbf16>, vector<784x128xbf16>, vector<8x128xf32> -> vector<8x128xf32>
    %c0_5 = arith.constant 0 : index
    %c0_6 = arith.constant 0 : index
    %4 = vector.load %arg11[%c0_5, %c0_6] : memref<1x128xf32, #tpu.memory_space<vmem>>, vector<1x128xf32>
    %5 = vector.broadcast %4 : vector<1x128xf32> to vector<8x128xf32>
    %6 = arith.addf %3, %5 : vector<8x128xf32>
    %c0_7 = arith.constant 0 : index
    %c0_8 = arith.constant 0 : index
    %7 = vector.load %arg16[%c0_7, %c0_8] : memref<1x128xf32, #tpu.memory_space<vmem>>, vector<1x128xf32>
    %8 = vector.broadcast %7 : vector<1x128xf32> to vector<8x128xf32>
    %9 = arith.mulf %6, %8 : vector<8x128xf32>
    %10 = math.tanh %9 : vector<8x128xf32>
    %11 = arith.mulf %10, %10 : vector<8x128xf32>
    %cst_9 = arith.constant 1.000000e+00 : f32
    %12 = vector.broadcast %cst_9 : f32 to vector<8x128xf32>
    %13 = arith.subf %12, %11 : vector<8x128xf32>
    %14 = arith.truncf %10 : vector<8x128xf32> to vector<8x128xbf16>
    %c0_10 = arith.constant 0 : index
    %c0_11 = arith.constant 0 : index
    %15 = vector.load %arg4[%c0_10, %c0_11] : memref<128x128xbf16, #tpu.memory_space<vmem>>, vector<128x128xbf16>
    %cst_12 = arith.constant dense<0.000000e+00> : vector<8x128xf32>
    %16 = tpu.matmul %14, %15, %cst_12 {dimension_numbers = #tpu.dot_dimension_numbers<[1], [0], [0], [1], [0, 0, 1, 1], [], []>} : vector<8x128xbf16>, vector<128x128xbf16>, vector<8x128xf32> -> vector<8x128xf32>
    %c0_13 = arith.constant 0 : index
    %c0_14 = arith.constant 0 : index
    %17 = vector.load %arg12[%c0_13, %c0_14] : memref<1x128xf32, #tpu.memory_space<vmem>>, vector<1x128xf32>
    %18 = vector.broadcast %17 : vector<1x128xf32> to vector<8x128xf32>
    %19 = arith.addf %16, %18 : vector<8x128xf32>
    %20 = arith.truncf %13 : vector<8x128xf32> to vector<8x128xbf16>
    %c0_15 = arith.constant 0 : index
    %c0_16 = arith.constant 0 : index
    %21 = vector.load %arg8[%c0_15, %c0_16] : memref<128x128xbf16, #tpu.memory_space<vmem>>, vector<128x128xbf16>
    %cst_17 = arith.constant dense<0.000000e+00> : vector<8x128xf32>
    %22 = tpu.matmul %20, %21, %cst_17 {dimension_numbers = #tpu.dot_dimension_numbers<[1], [0], [0], [1], [0, 0, 1, 1], [], []>} : vector<8x128xbf16>, vector<128x128xbf16>, vector<8x128xf32> -> vector<8x128xf32>
    %c0_18 = arith.constant 0 : index
    %c0_19 = arith.constant 0 : index
    %23 = vector.load %arg17[%c0_18, %c0_19] : memref<1x128xf32, #tpu.memory_space<vmem>>, vector<1x128xf32>
    %24 = vector.broadcast %23 : vector<1x128xf32> to vector<8x128xf32>
    %25 = arith.addf %22, %24 : vector<8x128xf32>
    %cst_20 = arith.constant 0.797884583 : f32
    %26 = vector.broadcast %cst_20 : f32 to vector<8x128xf32>
    %27 = arith.mulf %26, %19 : vector<8x128xf32>
    %28 = math.rsqrt %25 : vector<8x128xf32>
    %29 = arith.mulf %27, %28 : vector<8x128xf32>
    %30 = math.tanh %29 : vector<8x128xf32>
    %31 = arith.mulf %30, %30 : vector<8x128xf32>
    %cst_21 = arith.constant 1.000000e+00 : f32
    %32 = vector.broadcast %cst_21 : f32 to vector<8x128xf32>
    %33 = arith.subf %32, %31 : vector<8x128xf32>
    %34 = arith.truncf %30 : vector<8x128xf32> to vector<8x128xbf16>
    %c0_22 = arith.constant 0 : index
    %c0_23 = arith.constant 0 : index
    %35 = vector.load %arg5[%c0_22, %c0_23] : memref<128x128xbf16, #tpu.memory_space<vmem>>, vector<128x128xbf16>
    %cst_24 = arith.constant dense<0.000000e+00> : vector<8x128xf32>
    %36 = tpu.matmul %34, %35, %cst_24 {dimension_numbers = #tpu.dot_dimension_numbers<[1], [0], [0], [1], [0, 0, 1, 1], [], []>} : vector<8x128xbf16>, vector<128x128xbf16>, vector<8x128xf32> -> vector<8x128xf32>
    %c0_25 = arith.constant 0 : index
    %c0_26 = arith.constant 0 : index
    %37 = vector.load %arg13[%c0_25, %c0_26] : memref<1x128xf32, #tpu.memory_space<vmem>>, vector<1x128xf32>
    %38 = vector.broadcast %37 : vector<1x128xf32> to vector<8x128xf32>
    %39 = arith.addf %36, %38 : vector<8x128xf32>
    %40 = arith.truncf %33 : vector<8x128xf32> to vector<8x128xbf16>
    %c0_27 = arith.constant 0 : index
    %c0_28 = arith.constant 0 : index
    %41 = vector.load %arg9[%c0_27, %c0_28] : memref<128x128xbf16, #tpu.memory_space<vmem>>, vector<128x128xbf16>
    %cst_29 = arith.constant dense<0.000000e+00> : vector<8x128xf32>
    %42 = tpu.matmul %40, %41, %cst_29 {dimension_numbers = #tpu.dot_dimension_numbers<[1], [0], [0], [1], [0, 0, 1, 1], [], []>} : vector<8x128xbf16>, vector<128x128xbf16>, vector<8x128xf32> -> vector<8x128xf32>
    %c0_30 = arith.constant 0 : index
    %c0_31 = arith.constant 0 : index
    %43 = vector.load %arg18[%c0_30, %c0_31] : memref<1x128xf32, #tpu.memory_space<vmem>>, vector<1x128xf32>
    %44 = vector.broadcast %43 : vector<1x128xf32> to vector<8x128xf32>
    %45 = arith.addf %42, %44 : vector<8x128xf32>
    %cst_32 = arith.constant 0.797884583 : f32
    %46 = vector.broadcast %cst_32 : f32 to vector<8x128xf32>
    %47 = arith.mulf %46, %39 : vector<8x128xf32>
    %48 = math.rsqrt %45 : vector<8x128xf32>
    %49 = arith.mulf %47, %48 : vector<8x128xf32>
    %50 = math.tanh %49 : vector<8x128xf32>
    %51 = arith.truncf %50 : vector<8x128xf32> to vector<8x128xbf16>
    %c0_33 = arith.constant 0 : index
    %c0_34 = arith.constant 0 : index
    %52 = vector.load %arg6[%c0_33, %c0_34] : memref<128x128xbf16, #tpu.memory_space<vmem>>, vector<128x128xbf16>
    %cst_35 = arith.constant dense<0.000000e+00> : vector<8x128xf32>
    %53 = tpu.matmul %51, %52, %cst_35 {dimension_numbers = #tpu.dot_dimension_numbers<[1], [0], [0], [1], [0, 0, 1, 1], [], []>} : vector<8x128xbf16>, vector<128x128xbf16>, vector<8x128xf32> -> vector<8x128xf32>
    %c0_36 = arith.constant 0 : index
    %c0_37 = arith.constant 0 : index
    %54 = vector.load %arg14[%c0_36, %c0_37] : memref<1x128xf32, #tpu.memory_space<vmem>>, vector<1x128xf32>
    %55 = vector.broadcast %54 : vector<1x128xf32> to vector<8x128xf32>
    %56 = arith.addf %53, %55 : vector<8x128xf32>
    %57 = arith.truncf %33 : vector<8x128xf32> to vector<8x128xbf16>
    %c0_38 = arith.constant 0 : index
    %c0_39 = arith.constant 0 : index
    %58 = vector.load %arg10[%c0_38, %c0_39] : memref<128x128xbf16, #tpu.memory_space<vmem>>, vector<128x128xbf16>
    %cst_40 = arith.constant dense<0.000000e+00> : vector<8x128xf32>
    %59 = tpu.matmul %57, %58, %cst_40 {dimension_numbers = #tpu.dot_dimension_numbers<[1], [0], [0], [1], [0, 0, 1, 1], [], []>} : vector<8x128xbf16>, vector<128x128xbf16>, vector<8x128xf32> -> vector<8x128xf32>
    %c0_41 = arith.constant 0 : index
    %c0_42 = arith.constant 0 : index
    %60 = vector.load %arg19[%c0_41, %c0_42] : memref<1x128xf32, #tpu.memory_space<vmem>>, vector<1x128xf32>
    %61 = vector.broadcast %60 : vector<1x128xf32> to vector<8x128xf32>
    %62 = arith.addf %59, %61 : vector<8x128xf32>
    %cst_43 = arith.constant 0.797884583 : f32
    %63 = vector.broadcast %cst_43 : f32 to vector<8x128xf32>
    %64 = arith.mulf %63, %56 : vector<8x128xf32>
    %65 = math.rsqrt %62 : vector<8x128xf32>
    %66 = arith.mulf %64, %65 : vector<8x128xf32>
    %67 = math.tanh %66 : vector<8x128xf32>
    %68 = arith.truncf %67 : vector<8x128xf32> to vector<8x128xbf16>
    %c0_44 = arith.constant 0 : index
    %c0_45 = arith.constant 0 : index
    %69 = vector.load %arg7[%c0_44, %c0_45] : memref<128x128xbf16, #tpu.memory_space<vmem>>, vector<128x128xbf16>
    %cst_46 = arith.constant dense<0.000000e+00> : vector<8x128xf32>
    %70 = tpu.matmul %68, %69, %cst_46 {dimension_numbers = #tpu.dot_dimension_numbers<[1], [0], [0], [1], [0, 0, 1, 1], [], []>} : vector<8x128xbf16>, vector<128x128xbf16>, vector<8x128xf32> -> vector<8x128xf32>
    %c0_47 = arith.constant 0 : index
    %c0_48 = arith.constant 0 : index
    %71 = vector.load %arg15[%c0_47, %c0_48] : memref<1x128xf32, #tpu.memory_space<vmem>>, vector<1x128xf32>
    %72 = vector.broadcast %71 : vector<1x128xf32> to vector<8x128xf32>
    %73 = arith.addf %70, %72 : vector<8x128xf32>
    %cst_49 = arith.constant dense<0xFF800000> : vector<8xf32>
    %74 = vector.multi_reduction <maximumf>, %73, %cst_49 [1] : vector<8x128xf32> to vector<8xf32>
    %75 = vector.shape_cast %74 : vector<8xf32> to vector<8x1xf32>
    %76 = vector.broadcast %75 : vector<8x1xf32> to vector<8x128xf32>
    %77 = arith.subf %73, %76 : vector<8x128xf32>
    %78 = math.exp %77 : vector<8x128xf32>
    %cst_50 = arith.constant dense<0.000000e+00> : vector<8xf32>
    %79 = vector.multi_reduction <add>, %78, %cst_50 [1] : vector<8x128xf32> to vector<8xf32>
    %80 = vector.shape_cast %79 : vector<8xf32> to vector<8x1xf32>
    %81 = math.log %80 : vector<8x1xf32>
    %82 = vector.broadcast %81 : vector<8x1xf32> to vector<8x128xf32>
    %83 = arith.subf %77, %82 : vector<8x128xf32>
    %c0_51 = arith.constant 0 : index
    %c0_52 = arith.constant 0 : index
    %84 = vector.load %arg22[%c0_51, %c0_52] : memref<8x128xf32, #tpu.memory_space<vmem>>, vector<8x128xf32>
    tpu.vector_store %arg22[%c0_51, %c0_52], %10 {strides = array<i32>} : memref<8x128xf32, #tpu.memory_space<vmem>>, vector<8x128xf32>,
    %c0_53 = arith.constant 0 : index
    %c0_54 = arith.constant 0 : index
    %85 = vector.load %arg23[%c0_53, %c0_54] : memref<8x128xf32, #tpu.memory_space<vmem>>, vector<8x128xf32>
    tpu.vector_store %arg23[%c0_53, %c0_54], %30 {strides = array<i32>} : memref<8x128xf32, #tpu.memory_space<vmem>>, vector<8x128xf32>,
    %c0_55 = arith.constant 0 : index
    %c0_56 = arith.constant 0 : index
    %86 = vector.load %arg24[%c0_55, %c0_56] : memref<8x128xf32, #tpu.memory_space<vmem>>, vector<8x128xf32>
    tpu.vector_store %arg24[%c0_55, %c0_56], %50 {strides = array<i32>} : memref<8x128xf32, #tpu.memory_space<vmem>>, vector<8x128xf32>,
    %c0_57 = arith.constant 0 : index
    %c0_58 = arith.constant 0 : index
    %87 = vector.load %arg25[%c0_57, %c0_58] : memref<8x128xf32, #tpu.memory_space<vmem>>, vector<8x128xf32>
    tpu.vector_store %arg25[%c0_57, %c0_58], %67 {strides = array<i32>} : memref<8x128xf32, #tpu.memory_space<vmem>>, vector<8x128xf32>,
    %c0_59 = arith.constant 0 : index
    %c0_60 = arith.constant 0 : index
    %88 = vector.load %arg20[%c0_59, %c0_60] : memref<8x128xf32, #tpu.memory_space<vmem>>, vector<8x128xf32>
    tpu.vector_store %arg20[%c0_59, %c0_60], %73 {strides = array<i32>} : memref<8x128xf32, #tpu.memory_space<vmem>>, vector<8x128xf32>,
    %c0_61 = arith.constant 0 : index
    %c0_62 = arith.constant 0 : index
    %89 = vector.load %arg21[%c0_61, %c0_62] : memref<8x128xf32, #tpu.memory_space<vmem>>, vector<8x128xf32>
    tpu.vector_store %arg21[%c0_61, %c0_62], %83 {strides = array<i32>} : memref<8x128xf32, #tpu.memory_space<vmem>>, vector<8x128xf32>,
    %c8_i32 = arith.constant 8 : i32
    %90 = arith.muli %arg0, %c8_i32 : i32
    %91 = tpu.iota {dimensions = array<i32: 0>} : vector<8x1xi32>
    %92 = vector.broadcast %90 : i32 to vector<8x1xi32>
    %93 = arith.addi %92, %91 : vector<8x1xi32>
    %c8_i32_63 = arith.constant 8 : i32
    %94 = vector.broadcast %c8_i32_63 : i32 to vector<8x1xi32>
    %95 = arith.cmpi slt, %93, %94 : vector<8x1xi32>
    %96 = arith.extui %95 : vector<8x1xi1> to vector<8x1xi32>
    %97 = arith.sitofp %96 : vector<8x1xi32> to vector<8x1xf32>
    %98 = tpu.iota {dimensions = array<i32: 1>} : vector<8x128xi32>
    %99 = vector.broadcast %1 : vector<8x1xi32> to vector<8x128xi32>
    %100 = arith.cmpi eq, %98, %99 : vector<8x128xi32>
    %101 = arith.extui %100 : vector<8x128xi1> to vector<8x128xi32>
    %102 = arith.sitofp %101 : vector<8x128xi32> to vector<8x128xf32>
    %103 = arith.mulf %83, %102 : vector<8x128xf32>
    %cst_64 = arith.constant dense<0.000000e+00> : vector<8xf32>
    %104 = vector.multi_reduction <add>, %103, %cst_64 [1] : vector<8x128xf32> to vector<8xf32>
    %105 = vector.shape_cast %104 : vector<8xf32> to vector<8x1xf32>
    %cst_65 = arith.constant 0.000000e+00 : f32
    %106 = vector.broadcast %cst_65 : f32 to vector<8x1xf32>
    %107 = arith.subf %106, %105 : vector<8x1xf32>
    %108 = arith.mulf %107, %97 : vector<8x1xf32>
    %109 = vector.shape_cast %108 : vector<8x1xf32> to vector<1x8x1xf32>
    %cst_66 = arith.constant dense<0.000000e+00> : vector<1xf32>
    %110 = vector.multi_reduction <add>, %109, %cst_66 [1, 2] : vector<1x8x1xf32> to vector<1xf32>
    %111 = vector.shape_cast %110 : vector<1xf32> to vector<1x1x1xf32>
    %112 = vector.extract %111[0, 0, 0] : f32 from vector<1x1x1xf32>
    %113 = vector.broadcast %75 : vector<8x1xf32> to vector<8x128xf32>
    %114 = arith.cmpf oge, %73, %113 : vector<8x128xf32>
    %c128_i32 = arith.constant 128 : i32
    %115 = vector.broadcast %c128_i32 : i32 to vector<8x128xi32>
    %116 = arith.select %114, %98, %115 : vector<8x128xi1>, vector<8x128xi32>
    %cst_67 = arith.constant dense<2147483647> : vector<8xi32>
    %117 = vector.multi_reduction <minsi>, %116, %cst_67 [1] : vector<8x128xi32> to vector<8xi32>
    %118 = vector.shape_cast %117 : vector<8xi32> to vector<8x1xi32>
    %119 = arith.cmpi eq, %118, %1 : vector<8x1xi32>
    %120 = arith.extui %119 : vector<8x1xi1> to vector<8x1xi32>
    %121 = arith.sitofp %120 : vector<8x1xi32> to vector<8x1xf32>
    %122 = arith.mulf %121, %97 : vector<8x1xf32>
    %123 = vector.shape_cast %122 : vector<8x1xf32> to vector<1x8x1xf32>
    %cst_68 = arith.constant dense<0.000000e+00> : vector<1xf32>
    %124 = vector.multi_reduction <add>, %123, %cst_68 [1, 2] : vector<1x8x1xf32> to vector<1xf32>
    %125 = vector.shape_cast %124 : vector<1xf32> to vector<1x1x1xf32>
    %126 = vector.extract %125[0, 0, 0] : f32 from vector<1x1x1xf32>
    %127 = tpu.iota {dimensions = array<i32: 0>} : vector<8x128xi32>
    %128 = tpu.iota {dimensions = array<i32: 1>} : vector<8x128xi32>
    %c0_i32 = arith.constant 0 : i32
    %129 = vector.broadcast %c0_i32 : i32 to vector<8x128xi32>
    %130 = arith.cmpi eq, %127, %129 : vector<8x128xi32>
    %c0_i32_69 = arith.constant 0 : i32
    %131 = vector.broadcast %c0_i32_69 : i32 to vector<8x128xi32>
    %132 = arith.cmpi eq, %128, %131 : vector<8x128xi32>
    %133 = arith.andi %130, %132 : vector<8x128xi1>
    %c0_i32_70 = arith.constant 0 : i32
    %134 = vector.broadcast %c0_i32_70 : i32 to vector<8x128xi32>
    %135 = arith.cmpi eq, %127, %134 : vector<8x128xi32>
    %c1_i32 = arith.constant 1 : i32
    %136 = vector.broadcast %c1_i32 : i32 to vector<8x128xi32>
    %137 = arith.cmpi eq, %128, %136 : vector<8x128xi32>
    %138 = arith.andi %135, %137 : vector<8x128xi1>
    %cst_71 = arith.constant 0.000000e+00 : f32
    %139 = vector.broadcast %126 : f32 to vector<8x128xf32>
    %140 = vector.broadcast %cst_71 : f32 to vector<8x128xf32>
    %141 = arith.select %138, %139, %140 : vector<8x128xi1>, vector<8x128xf32>
    %142 = vector.broadcast %112 : f32 to vector<8x128xf32>
    %143 = arith.select %133, %142, %141 : vector<8x128xi1>, vector<8x128xf32>
    %c0_72 = arith.constant 0 : index
    %c0_73 = arith.constant 0 : index
    %144 = vector.load %arg26[%c0_72, %c0_73] : memref<8x128xf32, #tpu.memory_space<vmem>>, vector<8x128xf32>
    tpu.vector_store %arg26[%c0_72, %c0_73], %143 {strides = array<i32>} : memref<8x128xf32, #tpu.memory_space<vmem>>, vector<8x128xf32>,
    return
  }
  func.func @transform_0(%arg0: i32) -> (i32, i32) {
    %c0_i32 = arith.constant 0 : i32
    %c0_i32_0 = arith.constant 0 : i32
    return %arg0, %c0_i32 : i32, i32
  }
  func.func @transform_1(%arg0: i32) -> (i32, i32) {
    %c0_i32 = arith.constant 0 : i32
    %c0_i32_0 = arith.constant 0 : i32
    return %arg0, %c0_i32 : i32, i32
  }
  func.func @transform_2(%arg0: i32) -> (i32, i32) {
    %c0_i32 = arith.constant 0 : i32
    %c0_i32_0 = arith.constant 0 : i32
    %c0_i32_1 = arith.constant 0 : i32
    return %c0_i32, %c0_i32_0 : i32, i32
  }
  func.func @transform_3(%arg0: i32) -> (i32, i32) {
    %c0_i32 = arith.constant 0 : i32
    %c0_i32_0 = arith.constant 0 : i32
    %c0_i32_1 = arith.constant 0 : i32
    return %c0_i32, %c0_i32_0 : i32, i32
  }
  func.func @transform_4(%arg0: i32) -> (i32, i32) {
    %c0_i32 = arith.constant 0 : i32
    %c0_i32_0 = arith.constant 0 : i32
    %c0_i32_1 = arith.constant 0 : i32
    return %c0_i32, %c0_i32_0 : i32, i32
  }
  func.func @transform_5(%arg0: i32) -> (i32, i32) {
    %c0_i32 = arith.constant 0 : i32
    %c0_i32_0 = arith.constant 0 : i32
    %c0_i32_1 = arith.constant 0 : i32
    return %c0_i32, %c0_i32_0 : i32, i32
  }
  func.func @transform_6(%arg0: i32) -> (i32, i32) {
    %c0_i32 = arith.constant 0 : i32
    %c0_i32_0 = arith.constant 0 : i32
    %c0_i32_1 = arith.constant 0 : i32
    return %c0_i32, %c0_i32_0 : i32, i32
  }
  func.func @transform_7(%arg0: i32) -> (i32, i32) {
    %c0_i32 = arith.constant 0 : i32
    %c0_i32_0 = arith.constant 0 : i32
    %c0_i32_1 = arith.constant 0 : i32
    return %c0_i32, %c0_i32_0 : i32, i32
  }
  func.func @transform_8(%arg0: i32) -> (i32, i32) {
    %c0_i32 = arith.constant 0 : i32
    %c0_i32_0 = arith.constant 0 : i32
    %c0_i32_1 = arith.constant 0 : i32
    return %c0_i32, %c0_i32_0 : i32, i32
  }
  func.func @transform_9(%arg0: i32) -> (i32, i32) {
    %c0_i32 = arith.constant 0 : i32
    %c0_i32_0 = arith.constant 0 : i32
    %c0_i32_1 = arith.constant 0 : i32
    return %c0_i32, %c0_i32_0 : i32, i32
  }
  func.func @transform_10(%arg0: i32) -> (i32, i32) {
    %c0_i32 = arith.constant 0 : i32
    %c0_i32_0 = arith.constant 0 : i32
    %c0_i32_1 = arith.constant 0 : i32
    return %c0_i32, %c0_i32_0 : i32, i32
  }
  func.func @transform_11(%arg0: i32) -> (i32, i32) {
    %c0_i32 = arith.constant 0 : i32
    %c0_i32_0 = arith.constant 0 : i32
    %c0_i32_1 = arith.constant 0 : i32
    return %c0_i32, %c0_i32_0 : i32, i32
  }
  func.func @transform_12(%arg0: i32) -> (i32, i32) {
    %c0_i32 = arith.constant 0 : i32
    %c0_i32_0 = arith.constant 0 : i32
    %c0_i32_1 = arith.constant 0 : i32
    return %c0_i32, %c0_i32_0 : i32, i32
  }
  func.func @transform_13(%arg0: i32) -> (i32, i32) {
    %c0_i32 = arith.constant 0 : i32
    %c0_i32_0 = arith.constant 0 : i32
    %c0_i32_1 = arith.constant 0 : i32
    return %c0_i32, %c0_i32_0 : i32, i32
  }
  func.func @transform_14(%arg0: i32) -> (i32, i32) {
    %c0_i32 = arith.constant 0 : i32
    %c0_i32_0 = arith.constant 0 : i32
    %c0_i32_1 = arith.constant 0 : i32
    return %c0_i32, %c0_i32_0 : i32, i32
  }
  func.func @transform_15(%arg0: i32) -> (i32, i32) {
    %c0_i32 = arith.constant 0 : i32
    %c0_i32_0 = arith.constant 0 : i32
    %c0_i32_1 = arith.constant 0 : i32
    return %c0_i32, %c0_i32_0 : i32, i32
  }
  func.func @transform_16(%arg0: i32) -> (i32, i32) {
    %c0_i32 = arith.constant 0 : i32
    %c0_i32_0 = arith.constant 0 : i32
    %c0_i32_1 = arith.constant 0 : i32
    return %c0_i32, %c0_i32_0 : i32, i32
  }
  func.func @transform_17(%arg0: i32) -> (i32, i32) {
    %c0_i32 = arith.constant 0 : i32
    %c0_i32_0 = arith.constant 0 : i32
    %c0_i32_1 = arith.constant 0 : i32
    return %c0_i32, %c0_i32_0 : i32, i32
  }
  func.func @transform_18(%arg0: i32) -> (i32, i32) {
    %c0_i32 = arith.constant 0 : i32
    %c0_i32_0 = arith.constant 0 : i32
    %c0_i32_1 = arith.constant 0 : i32
    return %c0_i32, %c0_i32_0 : i32, i32
  }
  func.func @transform_19(%arg0: i32) -> (i32, i32) {
    %c0_i32 = arith.constant 0 : i32
    %c0_i32_0 = arith.constant 0 : i32
    return %arg0, %c0_i32 : i32, i32
  }
  func.func @transform_20(%arg0: i32) -> (i32, i32) {
    %c0_i32 = arith.constant 0 : i32
    %c0_i32_0 = arith.constant 0 : i32
    return %arg0, %c0_i32 : i32, i32
  }
  func.func @transform_21(%arg0: i32) -> (i32, i32) {
    %c0_i32 = arith.constant 0 : i32
    %c0_i32_0 = arith.constant 0 : i32
    return %arg0, %c0_i32 : i32, i32
  }
  func.func @transform_22(%arg0: i32) -> (i32, i32) {
    %c0_i32 = arith.constant 0 : i32
    %c0_i32_0 = arith.constant 0 : i32
    return %arg0, %c0_i32 : i32, i32
  }
  func.func @transform_23(%arg0: i32) -> (i32, i32) {
    %c0_i32 = arith.constant 0 : i32
    %c0_i32_0 = arith.constant 0 : i32
    return %arg0, %c0_i32 : i32, i32
  }
  func.func @transform_24(%arg0: i32) -> (i32, i32) {
    %c0_i32 = arith.constant 0 : i32
    %c0_i32_0 = arith.constant 0 : i32
    return %arg0, %c0_i32 : i32, i32
  }
  func.func @transform_25(%arg0: i32) -> (i32, i32) {
    %c0_i32 = arith.constant 0 : i32
    %c0_i32_0 = arith.constant 0 : i32
    return %arg0, %c0_i32 : i32, i32
  }
}

</mosaic_0001>

<bundles_post_ra>
// kernel: tpu_custom_call.1
= control target key start
LH: loop header
LB: loop body
LE: loop exit
PB: predicated region body
PF: predicated region fallthrough
CT: control target
= control target key end

     0   :  { %s3190_s0 = inlined_call_operand.hbm [shape: bf16[8,784], index: 0, kind: input, shape index: {}]   ;;  %s3191_s1 = inlined_call_operand.vmem [shape: s32[8,1], index: 1, kind: input, shape index: {}]   ;;  %s3192_s2 = inlined_call_operand.hbm [shape: bf16[784,128], index: 2, kind: input, shape index: {}]   ;;  %s3193_s3 = inlined_call_operand.hbm [shape: bf16[128,128], index: 3, kind: input, shape index: {}]   ;;  %s3194_s4 = inlined_call_operand.hbm [shape: bf16[128,128], index: 4, kind: input, shape index: {}]   ;;  %s3195_s5 = inlined_call_operand.hbm [shape: bf16[128,128], index: 5, kind: input, shape index: {}]   ;;  %s3196_s6 = inlined_call_operand.hbm [shape: bf16[128,128], index: 6, kind: input, shape index: {}]   ;;  %s3197_s7 = inlined_call_operand.hbm [shape: bf16[128,128], index: 7, kind: input, shape index: {}]   ;;  %s3198_s8 = inlined_call_operand.hbm [shape: bf16[128,128], index: 8, kind: input, shape index: {}]   ;;  %s3199_s9 = inlined_call_operand.hbm [shape: bf16[128,128], index: 9, kind: input, shape index: {}]   ;;  %s3200_s10 = inlined_call_operand.vmem [shape: f32[1,128], index: 10, kind: input, shape index: {}]   ;;  %s3201_s11 = inlined_call_operand.vmem [shape: f32[1,128], index: 11, kind: input, shape index: {}]   ;;  %s3202_s12 = inlined_call_operand.vmem [shape: f32[1,128], index: 12, kind: input, shape index: {}]   ;;  %s3203_s13 = inlined_call_operand.vmem [shape: f32[1,128], index: 13, kind: input, shape index: {}]   ;;  %s3204_s14 = inlined_call_operand.vmem [shape: f32[1,128], index: 14, kind: input, shape index: {}]   ;;  %s3205_s15 = inlined_call_operand.vmem [shape: f32[1,128], index: 15, kind: input, shape index: {}]   ;;  %s3206_s16 = inlined_call_operand.vmem [shape: f32[1,128], index: 16, kind: input, shape index: {}]   ;;  %s3207_s17 = inlined_call_operand.vmem [shape: f32[1,128], index: 17, kind: input, shape index: {}]   ;;  %s3208_s18 = inlined_call_operand.vmem [shape: f32[1,128], index: 18, kind: input, shape index: {}]   ;;  %s3209_s19 = inlined_call_operand.hbm [shape: f32[8,128], index: 19, kind: output, shape index: {0}]   ;;  %s3210_s20 = inlined_call_operand.hbm [shape: f32[8,128], index: 20, kind: output, shape index: {1}]   ;;  %s3211_s21 = inlined_call_operand.hbm [shape: f32[8,128], index: 21, kind: output, shape index: {2}]   ;;  %s3212_s22 = inlined_call_operand.hbm [shape: f32[8,128], index: 22, kind: output, shape index: {3}]   ;;  %s3213_s23 = inlined_call_operand.hbm [shape: f32[8,128], index: 23, kind: output, shape index: {4}]   ;;  %s3214_s24 = inlined_call_operand.hbm [shape: f32[8,128], index: 24, kind: output, shape index: {5}]   ;;  %s3215_s25 = inlined_call_operand.hbm [shape: f32[8,128], index: 25, kind: output, shape index: {6}]  }
   0x1   :  { %3228 = sst [smem:[#allocation36_spill]] %s3190_s0 }
   0x2   :  { %3229 = sst [smem:[#allocation37_spill]] %s3191_s1 }
   0x3   :  { %3230 = sst [smem:[#allocation38_spill]] %s3192_s2 }
   0x4   :  { %3231 = sst [smem:[#allocation39_spill]] %s3193_s3 }
   0x5   :  { %3232 = sst [smem:[#allocation40_spill]] %s3194_s4 }
   0x6   :  { %3233 = sst [smem:[#allocation41_spill]] %s3195_s5 }
   0x7   :  { %3234 = sst [smem:[#allocation42_spill]] %s3196_s6 }
   0x8   :  { %3235 = sst [smem:[#allocation43_spill]] %s3197_s7 }
   0x9   :  { %3236 = sst [smem:[#allocation44_spill]] %s3198_s8 }
   0xa   :  { %3237 = sst [smem:[#allocation45_spill]] %s3199_s9 }
   0xb   :  { %3238 = sst [smem:[#allocation46_spill]] %s3211_s21 }
   0xc   :  { %3239 = sst [smem:[#allocation47_spill]] %s3213_s23 }
   0xd   :  { %3240 = sst [smem:[#allocation48_spill]] %s3215_s25 }
   0xe   :  { %31 = vsyncpa [#allocation3], 0 }
   0xf   :  { %32 = vsyncpa [#allocation6], 0 }
  0x10   :  { %33 = vsyncpa [#allocation9], 0 }
  0x11   :  { %34 = vsyncpa [#allocation12], 0 }
  0x12   :  { %35 = vsyncpa [#allocation15], 0 }
  0x13   :  { %36 = vsyncpa [#allocation4], 0 }
  0x14   :  { %37 = vsyncpa [#allocation19], 0 }
  0x15   :  { %38 = vsyncpa [#allocation22], 0 }
  0x16   :  { %39 = vsyncpa [#allocation25], 0  ;;  %s2710_s29 = smov [#allocation5]   ;;  %s3241_s7 = sld [smem:[#allocation38_spill]] }
  0x17   :  { %s57_s2 = sshll.u32 %s2710_s29, 4  ;;  %s58_s2 = int_to_ptr.vmem [resolvable:$true] %s57_s2 }
  0x1c   :  { %s2340_s3 = scalar_lea.hbm %s3241_s7, 6272 }
  0x1d   :  { %p2341_p0 = scmp.ne.s32.totalorder %s3241_s7, %s2340_s3  ;;  %p2344_p1 = scmp.lt.u32.totalorder %s2340_s3, %s3241_s7 }
  0x1f   :  { %p2346_p2 = pnand %p2344_p1, %p2341_p0 }
  0x21   :  { %2349 = shalt.err (!%p2346_p2)
}
  0x22   :  { %s2350_s4 = scalar_lea.vmem %s58_s2, 6272  ;;  %p2355_p4 = scmp.lt.s32.totalorder %s58_s2, %s58_s2 }
  0x23   :  { %p2351_p3 = scmp.ne.s32.totalorder %s58_s2, %s2350_s4  ;;  %p2356_p5 = scmp.lt.s32.totalorder %s2350_s4, %s2350_s4 }
  0x25   :  { %p2357_p6 = por %p2356_p5, %p2355_p4 }
  0x27   :  { %p2358_p7 = pnand %p2357_p6, %p2351_p3 }
  0x29   :  { %2361 = shalt.err (!%p2358_p7)
}
  0x2a   :  { %s2711_s28 = smov 64   ;;  %s2712_s9 = smov 4  }
  0x2b   :  { %63 = dma.hbm_to_vmem [thread:$0]  %s3241_s7, 6272, %s58_s2, [#allocation6], %s2711_s28, %s2711_s28, %s2712_s9  }
  0x2c   :  { %s2713_s29 = smov [#allocation8]   ;;  %s2714_s30 = smov [#allocation11]  }
  0x2d   :  { %s81_s6 = sshll.u32 %s2713_s29, 4  ;;  %s105_s3 = sshll.u32 %s2714_s30, 4  ;;  %s82_s6 = int_to_ptr.vmem [resolvable:$true] %s81_s6  ;;  %s106_s3 = int_to_ptr.vmem [resolvable:$true] %s105_s3 }
  0x2e   :  { %s3242_s8 = sld [smem:[#allocation40_spill]] }
  0x34   :  { %s2362_s27 = scalar_lea.hbm %s3242_s8, 1024 }
  0x35   :  { %p2363_p8 = scmp.ne.s32.totalorder %s3242_s8, %s2362_s27  ;;  %p2366_p9 = scmp.lt.u32.totalorder %s2362_s27, %s3242_s8 }
  0x37   :  { %p2368_p10 = pnand %p2366_p9, %p2363_p8 }
  0x39   :  { %2371 = shalt.err (!%p2368_p10)
}
  0x3a   :  { %s2372_s2 = scalar_lea.vmem %s82_s6, 1024  ;;  %p2377_p12 = scmp.lt.s32.totalorder %s82_s6, %s82_s6 }
  0x3b   :  { %p2373_p11 = scmp.ne.s32.totalorder %s82_s6, %s2372_s2  ;;  %p2378_p13 = scmp.lt.s32.totalorder %s2372_s2, %s2372_s2 }
  0x3d   :  { %p2379_p0 = por %p2378_p13, %p2377_p12 }
  0x3f   :  { %p2380_p1 = pnand %p2379_p0, %p2373_p11 }
  0x41   :  { %2383 = shalt.err (!%p2380_p1)
}
  0x42   :  { %87 = dma.hbm_to_vmem [thread:$0]  %s3242_s8, 1024, %s82_s6, [#allocation9], %s2711_s28, %s2711_s28, %s2712_s9  }
  0x43   :  { %s3243_s23 = sld [smem:[#allocation42_spill]] }
  0x49   :  { %s2384_s0 = scalar_lea.hbm %s3243_s23, 1024 }
  0x4a   :  { %p2385_p2 = scmp.ne.s32.totalorder %s3243_s23, %s2384_s0  ;;  %p2388_p3 = scmp.lt.u32.totalorder %s2384_s0, %s3243_s23 }
  0x4c   :  { %p2390_p4 = pnand %p2388_p3, %p2385_p2 }
  0x4e   :  { %2393 = shalt.err (!%p2390_p4)
}
  0x4f   :  { %s2394_s27 = scalar_lea.vmem %s106_s3, 1024  ;;  %p2399_p6 = scmp.lt.s32.totalorder %s106_s3, %s106_s3 }
  0x50   :  { %p2395_p5 = scmp.ne.s32.totalorder %s106_s3, %s2394_s27  ;;  %p2400_p7 = scmp.lt.s32.totalorder %s2394_s27, %s2394_s27 }
  0x52   :  { %p2401_p8 = por %p2400_p7, %p2399_p6 }
  0x54   :  { %p2402_p9 = pnand %p2401_p8, %p2395_p5 }
  0x56   :  { %2405 = shalt.err (!%p2402_p9)
}
  0x57   :  { %111 = dma.hbm_to_vmem [thread:$0]  %s3243_s23, 1024, %s106_s3, [#allocation12], %s2711_s28, %s2711_s28, %s2712_s9  }
  0x58   :  { %s2715_s4 = smov [#allocation14]   ;;  %s2716_s7 = smov [#allocation2]  }
  0x59   :  { %s129_s2 = sshll.u32 %s2715_s4, 4  ;;  %s46_s5 = sshll.u32 %s2716_s7, 4  ;;  %s130_s2 = int_to_ptr.vmem [resolvable:$true] %s129_s2  ;;  %s47_s5 = int_to_ptr.vmem [resolvable:$true] %s46_s5 }
  0x5a   :  { %s3244_s0 = sld [smem:[#allocation44_spill]] }
  0x60   :  { %s2406_s29 = scalar_lea.hbm %s3244_s0, 1024 }
  0x61   :  { %p2407_p10 = scmp.ne.s32.totalorder %s3244_s0, %s2406_s29  ;;  %p2410_p11 = scmp.lt.u32.totalorder %s2406_s29, %s3244_s0 }
  0x63   :  { %p2412_p12 = pnand %p2410_p11, %p2407_p10 }
  0x65   :  { %2415 = shalt.err (!%p2412_p12)
}
  0x66   :  { %s2416_s3 = scalar_lea.vmem %s130_s2, 1024  ;;  %p2421_p0 = scmp.lt.s32.totalorder %s130_s2, %s130_s2 }
  0x67   :  { %p2417_p13 = scmp.ne.s32.totalorder %s130_s2, %s2416_s3  ;;  %p2422_p1 = scmp.lt.s32.totalorder %s2416_s3, %s2416_s3 }
  0x69   :  { %p2423_p2 = por %p2422_p1, %p2421_p0 }
  0x6b   :  { %p2424_p3 = pnand %p2423_p2, %p2417_p13 }
  0x6d   :  { %2427 = shalt.err (!%p2424_p3)
}
  0x6e   :  { %135 = dma.hbm_to_vmem [thread:$0]  %s3244_s0, 1024, %s130_s2, [#allocation15], %s2711_s28, %s2711_s28, %s2712_s9  }
  0x6f   :  { %s3245_s7 = sld [smem:[#allocation36_spill]] }
  0x75   :  { %s2428_s25 = scalar_lea.hbm %s3245_s7, 448 }
  0x76   :  { %p2429_p4 = scmp.ne.s32.totalorder %s3245_s7, %s2428_s25  ;;  %p2432_p5 = scmp.lt.u32.totalorder %s2428_s25, %s3245_s7 }
  0x78   :  { %p2434_p6 = pnand %p2432_p5, %p2429_p4 }
  0x7a   :  { %2437 = shalt.err (!%p2434_p6)
}
  0x7b   :  { %s2438_s1 = scalar_lea.vmem %s47_s5, 448  ;;  %p2443_p8 = scmp.lt.s32.totalorder %s47_s5, %s47_s5 }
  0x7c   :  { %p2439_p7 = scmp.ne.s32.totalorder %s47_s5, %s2438_s1  ;;  %p2444_p9 = scmp.lt.s32.totalorder %s2438_s1, %s2438_s1 }
  0x7e   :  { %p2445_p10 = por %p2444_p9, %p2443_p8 }
  0x80   :  { %p2446_p11 = pnand %p2445_p10, %p2439_p7 }
  0x82   :  { %2449 = shalt.err (!%p2446_p11)
}
  0x83   :  { %49 = dma.hbm_to_vmem [thread:$0]  %s3245_s7, 448, %s47_s5, [#allocation3]  }
  0x84   :  { %s2717_s27 = smov [#allocation7]   ;;  %s2718_s23 = smov [#allocation10]  }
  0x85   :  { %s69_s3 = sshll.u32 %s2717_s27, 4  ;;  %s93_s6 = sshll.u32 %s2718_s23, 4  ;;  %s70_s3 = int_to_ptr.vmem [resolvable:$true] %s69_s3  ;;  %s94_s6 = int_to_ptr.vmem [resolvable:$true] %s93_s6 }
  0x86   :  { %s3246_s25 = sld [smem:[#allocation39_spill]] }
  0x8c   :  { %s2450_s21 = scalar_lea.hbm %s3246_s25, 1024 }
  0x8d   :  { %p2451_p12 = scmp.ne.s32.totalorder %s3246_s25, %s2450_s21  ;;  %p2454_p13 = scmp.lt.u32.totalorder %s2450_s21, %s3246_s25 }
  0x8f   :  { %p2456_p0 = pnand %p2454_p13, %p2451_p12 }
  0x91   :  { %2459 = shalt.err (!%p2456_p0)
}
  0x92   :  { %s2460_s5 = scalar_lea.vmem %s70_s3, 1024  ;;  %p2465_p2 = scmp.lt.s32.totalorder %s70_s3, %s70_s3 }
  0x93   :  { %p2461_p1 = scmp.ne.s32.totalorder %s70_s3, %s2460_s5  ;;  %p2466_p3 = scmp.lt.s32.totalorder %s2460_s5, %s2460_s5 }
  0x95   :  { %p2467_p4 = por %p2466_p3, %p2465_p2 }
  0x97   :  { %p2468_p5 = pnand %p2467_p4, %p2461_p1 }
  0x99   :  { %2471 = shalt.err (!%p2468_p5)
}
  0x9a   :  { %75 = dma.hbm_to_vmem [thread:$0]  %s3246_s25, 1024, %s70_s3, [#allocation6], %s2711_s28, %s2711_s28, %s2712_s9  }
  0x9b   :  { %s3247_s23 = sld [smem:[#allocation41_spill]] }
  0xa1   :  { %s2472_s8 = scalar_lea.hbm %s3247_s23, 1024 }
  0xa2   :  { %p2473_p6 = scmp.ne.s32.totalorder %s3247_s23, %s2472_s8  ;;  %p2476_p7 = scmp.lt.u32.totalorder %s2472_s8, %s3247_s23 }
  0xa4   :  { %p2478_p8 = pnand %p2476_p7, %p2473_p6 }
  0xa6   :  { %2481 = shalt.err (!%p2478_p8)
}
  0xa7   :  { %s2482_s26 = scalar_lea.vmem %s94_s6, 1024  ;;  %p2487_p10 = scmp.lt.s32.totalorder %s94_s6, %s94_s6 }
  0xa8   :  { %p2483_p9 = scmp.ne.s32.totalorder %s94_s6, %s2482_s26  ;;  %p2488_p11 = scmp.lt.s32.totalorder %s2482_s26, %s2482_s26 }
  0xaa   :  { %p2489_p12 = por %p2488_p11, %p2487_p10 }
  0xac   :  { %p2490_p13 = pnand %p2489_p12, %p2483_p9 }
  0xae   :  { %2493 = shalt.err (!%p2490_p13)
}
  0xaf   :  { %99 = dma.hbm_to_vmem [thread:$0]  %s3247_s23, 1024, %s94_s6, [#allocation9], %s2711_s28, %s2711_s28, %s2712_s9  }
  0xb0   :  { %s2719_s1 = smov [#allocation13]   ;;  %s2720_s7 = smov [#allocation16]  }
  0xb1   :  { %s117_s5 = sshll.u32 %s2719_s1, 4  ;;  %s141_s2 = sshll.u32 %s2720_s7, 4  ;;  %s118_s5 = int_to_ptr.vmem [resolvable:$true] %s117_s5  ;;  %s142_s2 = int_to_ptr.vmem [resolvable:$true] %s141_s2 }
  0xb2   :  { %s3248_s8 = sld [smem:[#allocation43_spill]] }
  0xb8   :  { %s2494_s4 = scalar_lea.hbm %s3248_s8, 1024 }
  0xb9   :  { %p2495_p0 = scmp.ne.s32.totalorder %s3248_s8, %s2494_s4  ;;  %p2498_p1 = scmp.lt.u32.totalorder %s2494_s4, %s3248_s8 }
  0xbb   :  { %p2500_p2 = pnand %p2498_p1, %p2495_p0 }
  0xbd   :  { %2503 = shalt.err (!%p2500_p2)
}
  0xbe   :  { %s2504_s6 = scalar_lea.vmem %s118_s5, 1024  ;;  %p2509_p4 = scmp.lt.s32.totalorder %s118_s5, %s118_s5 }
  0xbf   :  { %p2505_p3 = scmp.ne.s32.totalorder %s118_s5, %s2504_s6  ;;  %p2510_p5 = scmp.lt.s32.totalorder %s2504_s6, %s2504_s6 }
  0xc1   :  { %p2511_p6 = por %p2510_p5, %p2509_p4 }
  0xc3   :  { %p2512_p7 = pnand %p2511_p6, %p2505_p3 }
  0xc5   :  { %2515 = shalt.err (!%p2512_p7)
}
  0xc6   :  { %123 = dma.hbm_to_vmem [thread:$0]  %s3248_s8, 1024, %s118_s5, [#allocation12], %s2711_s28, %s2711_s28, %s2712_s9  }
  0xc7   :  { %s3249_s7 = sld [smem:[#allocation45_spill]] }
  0xcd   :  { %s2516_s0 = scalar_lea.hbm %s3249_s7, 1024 }
  0xce   :  { %p2517_p8 = scmp.ne.s32.totalorder %s3249_s7, %s2516_s0  ;;  %p2520_p9 = scmp.lt.u32.totalorder %s2516_s0, %s3249_s7 }
  0xd0   :  { %p2522_p10 = pnand %p2520_p9, %p2517_p8 }
  0xd2   :  { %2525 = shalt.err (!%p2522_p10)
}
  0xd3   :  { %s2526_s30 = scalar_lea.vmem %s142_s2, 1024  ;;  %p2531_p12 = scmp.lt.s32.totalorder %s142_s2, %s142_s2 }
  0xd4   :  { %p2527_p11 = scmp.ne.s32.totalorder %s142_s2, %s2526_s30  ;;  %p2532_p13 = scmp.lt.s32.totalorder %s2526_s30, %s2526_s30 }
  0xd6   :  { %p2533_p0 = por %p2532_p13, %p2531_p12 }
  0xd8   :  { %p2534_p1 = pnand %p2533_p0, %p2527_p11 }
  0xda   :  { %2537 = shalt.err (!%p2534_p1)
}
  0xdb   :  { %147 = dma.hbm_to_vmem [thread:$0]  %s3249_s7, 1024, %s142_s2, [#allocation15], %s2711_s28, %s2711_s28, %s2712_s9  }
  0xdc   :  { %2692 = dma.done.wait [#allocation3], 448  }
  0xdd   :  { %2693 = vsyncadd [#allocation3], 4294966848 }
  0xde   :  { %2694 = dma.done.wait [#allocation6], 7296  }
  0xdf   :  { %2695 = vsyncadd [#allocation6], 4294960000 }
  0xe0   :  { %2696 = dma.done.wait [#allocation9], 2048  }
  0xe1   :  { %2697 = vsyncadd [#allocation9], 4294965248 }
  0xe2   :  { %2698 = dma.done.wait [#allocation12], 2048  }
  0xe3   :  { %2699 = vsyncadd [#allocation12], 4294965248 }
  0xe4   :  { %2700 = dma.done.wait [#allocation15], 2048  }
  0xe5   :  { %2701 = vsyncadd [#allocation15], 4294965248  ;;  %v2210_v0 = vld [vmem:[#allocation5 + $0x40] sm:$0xff]   ;;  %v2214_v4 = vld [vmem:[#allocation5 + $0x48] sm:$0xff]   ;;  %v2721_v43 = vmov 0.0   ;;  %vm2722_vm0 = vmmov 0  }
  0xe6   :  { %v2211_v1 = vld [vmem:[#allocation5] sm:$0xff]   ;;  %1906 = vmatprep.subr.bf16.mxu0 %v2210_v0  ;;  %v2215_v5 = vld [vmem:[#allocation5 + $0x8] sm:$0xff]   ;;  %v2218_v8 = vld [vmem:[#allocation5 + $0x50] sm:$0xff]   ;;  %vm622_vm1 = vcmask 130048   ;;  %s3250_s27 = sld [smem:[#allocation37_spill]]  ;;  %vm1631_vm6 = vcmask 7168  }
  0xe7   :  { %v2212_v2 = vld [vmem:[#allocation5 + $0xc0] sm:$0xff]   ;;  %1907 = vmatpush3.bf16.msra.mxu0 %v2211_v1  ;;  %v2216_v6 = vld [vmem:[#allocation5 + $0xc8] sm:$0xff]   ;;  %v2219_v9 = vld [vmem:[#allocation5 + $0x10] sm:$0xff]   ;;  %s2724_s4 = smov [#allocation18]   ;;  %s2725_s29 = smov [#allocation21]  }
  0xe8   :  { %v2213_v3 = vld [vmem:[#allocation5 + $0x80] sm:$0xff]   ;;  %1928 = vmatprep.subr.bf16.mxu1 %v2212_v2  ;;  %1908 = vmatprep.subr.bf16.mxu0 %v2214_v4  ;;  %v2217_v7 = vld [vmem:[#allocation5 + $0x88] sm:$0xff]   ;;  %v2220_v10 = vld [vmem:[#allocation5 + $0xd0] sm:$0xff]   ;;  %s1698_s21 = sshll.u32 %s2724_s4, 4  ;;  %s1718_s30 = sshll.u32 %s2725_s29, 4  ;;  %s1699_s21 = int_to_ptr.vmem [resolvable:$true] %s1698_s21  ;;  %s1719_s30 = int_to_ptr.vmem [resolvable:$true] %s1718_s30 }
  0xe9   :  { %1929 = vmatpush3.bf16.msra.mxu1 %v2213_v3  ;;  %v2221_v11 = vld [vmem:[#allocation5 + $0x90] sm:$0xff]   ;;  %v2222_v12 = vld [vmem:[#allocation5 + $0x58] sm:$0xff]   ;;  %v2226_v16 = vld [vmem:[#allocation5 + $0x60] sm:$0xff]   ;;  %s2538_s5 = scalar_lea.vmem %s1699_s21, 128  ;;  %p2543_p3 = scmp.lt.s32.totalorder %s1699_s21, %s1699_s21 }
  0xea   :  { %1930 = vmatprep.subr.bf16.mxu1 %v2216_v6  ;;  %v2223_v13 = vld [vmem:[#allocation5 + $0x18] sm:$0xff]   ;;  %v2227_v17 = vld [vmem:[#allocation5 + $0x20] sm:$0xff]   ;;  %v2230_v20 = vld [vmem:[#allocation5 + $0x68] sm:$0xff]   ;;  %p2539_p2 = scmp.ne.s32.totalorder %s1699_s21, %s2538_s5  ;;  %p2544_p4 = scmp.lt.s32.totalorder %s2538_s5, %s2538_s5 }
  0xeb   :  { %1909 = vmatpush3.bf16.msra.mxu0 %v2215_v5  ;;  %v2224_v14 = vld [vmem:[#allocation5 + $0xd8] sm:$0xff]   ;;  %v2228_v18 = vld [vmem:[#allocation5 + $0xe0] sm:$0xff]   ;;  %v2231_v21 = vld [vmem:[#allocation5 + $0x28] sm:$0xff]  }
  0xec   :  { %1910 = vmatprep.subr.bf16.mxu0 %v2218_v8  ;;  %v2225_v15 = vld [vmem:[#allocation5 + $0x98] sm:$0xff]   ;;  %v2229_v19 = vld [vmem:[#allocation5 + $0xa0] sm:$0xff]   ;;  %v2232_v22 = vld [vmem:[#allocation5 + $0xe8] sm:$0xff]   ;;  %p2545_p5 = por %p2544_p4, %p2543_p3 }
  0xed   :  { %1931 = vmatpush3.bf16.msra.mxu1 %v2217_v7  ;;  %v2233_v23 = vld [vmem:[#allocation5 + $0xa8] sm:$0xff]   ;;  %v2234_v24 = vld [vmem:[#allocation5 + $0x70] sm:$0xff]   ;;  %v2238_v28 = vld [vmem:[#allocation5 + $0x78] sm:$0xff]  }
  0xee   :  { %1932 = vmatprep.subr.bf16.mxu1 %v2220_v10  ;;  %v2235_v25 = vld [vmem:[#allocation5 + $0x30] sm:$0xff]   ;;  %v2239_v29 = vld [vmem:[#allocation5 + $0x38] sm:$0xff]   ;;  %v194_v31 = vld [vmem:[#allocation2] sm:$0xff]  ;;  %p2546_p6 = pnand %p2545_p5, %p2539_p2 }
  0xef   :  { %1911 = vmatpush3.bf16.msra.mxu0 %v2219_v9  ;;  %v2236_v26 = vld [vmem:[#allocation5 + $0xf0] sm:$0xff]   ;;  %v2240_v30 = vld [vmem:[#allocation5 + $0xf8] sm:$0xff]   ;;  %v1783_v32 = vcombine.low %v194_v31, %v194_v31  ;;  %v1784_v33 = vcombine.high %v194_v31, %v194_v31  ;;  %v2244_v35 = vld [vmem:[#allocation5 + $0x140] sm:$0xff]  }
  0xf0   :  { %1912 = vmatprep.subr.bf16.mxu0 %v2222_v12  ;;  %v2237_v27 = vld [vmem:[#allocation5 + $0xb0] sm:$0xff]   ;;  %v2243_v34 = vld [vmem:[#allocation5 + $0xb8] sm:$0xff]   ;;  %v2247_v39 = vld [vmem:[#allocation5 + $0x100] sm:$0xff]  }
  0xf1   :  { %1933 = vmatpush3.bf16.msra.mxu1 %v2221_v11  ;;  %v195_v36 = vld [vmem:[#allocation2 + $0x8] sm:$0xff]  ;;  %658 = vmatprep.mubr.bf16.mxu0 %v1784_v33  ;;  %v2252_v45 = vld [vmem:[#allocation5 + $0x158] sm:$0xff]   ;;  %v2254_v47 = vld [vmem:[#allocation5 + $0x160] sm:$0xff]  }
  0xf2   :  { %1934 = vmatprep.subr.bf16.mxu1 %v2224_v14  ;;  %v1785_v37 = vcombine.low %v195_v36, %v195_v36  ;;  %v1786_v38 = vcombine.high %v195_v36, %v195_v36  ;;  %v2248_v40 = vld [vmem:[#allocation5 + $0x148] sm:$0xff]   ;;  %v2250_v42 = vld [vmem:[#allocation5 + $0x150] sm:$0xff]   ;;  %v2253_v46 = vld [vmem:[#allocation5 + $0x118] sm:$0xff]  }
  0xf3   :  { %1913 = vmatpush3.bf16.msra.mxu0 %v2223_v13  ;;  %v2249_v41 = vld [vmem:[#allocation5 + $0x108] sm:$0xff]   ;;  %v2251_v44 = vld [vmem:[#allocation5 + $0x110] sm:$0xff]   ;;  %v2255_v48 = vld [vmem:[#allocation5 + $0x120] sm:$0xff]  }
  0xf4   :  { %1914 = vmatprep.subr.bf16.mxu0 %v2226_v16  ;;  %698 = vmatprep.mubr.bf16.mxu1 %v1786_v38  ;;  %v2256_v49 = vld [vmem:[#allocation5 + $0x168] sm:$0xff]   ;;  %v2262_v50 = vld [vmem:[#allocation5 + $0x180] sm:$0xff]   ;;  %v196_v51 = vld [vmem:[#allocation2 + $0x10] sm:$0xff] }
  0xf5   :  { %1935 = vmatpush3.bf16.msra.mxu1 %v2225_v15  ;;  %v2257_v52 = vld [vmem:[#allocation5 + $0x128] sm:$0xff]   ;;  %v1788_v53 = vcombine.high %v196_v51, %v196_v51  ;;  %v2265_v54 = vld [vmem:[#allocation2 + $0x18] ss:$0 sps:$4 sm:$0xff]   ;;  %v2258_v55 = vld [vmem:[#allocation5 + $0x170] sm:$0xff]   ;;  %v1787_v59 = vcombine.low %v196_v51, %v196_v51 }
  0xf6   :  { %1936 = vmatprep.subr.bf16.mxu1 %v2228_v18  ;;  %v2259_v56 = vld [vmem:[#allocation5 + $0x130] sm:$0xff]   ;;  %v2260_v57 = vld [vmem:[#allocation5 + $0x178] sm:$0xff]   ;;  %v2266_v60 = vld [vmem:[#allocation7] sm:$0xff]  }
  0xf7   :  { %1915 = vmatpush3.bf16.msra.mxu0 %v2227_v17  ;;  %v2261_v58 = vld [vmem:[#allocation5 + $0x138] sm:$0xff]   ;;  %v2268_v61 = vld [vmem:[#allocation13] sm:$0xff]   ;;  %v2267_v62 = vld [vmem:[#allocation7 + $0x8] sm:$0xff]  }
  0xf8   :  { %1916 = vmatprep.subr.bf16.mxu0 %v2230_v20  ;;  %v2269_v63 = vld [vmem:[#allocation7 + $0x10] sm:$0xff]   ;;  %v2270_v0 = vld [vmem:[#allocation13 + $0x8] sm:$0xff]   ;;  %v2271_v1 = vld [vmem:[#allocation7 + $0x18] sm:$0xff]  }
  0xf9   :  { %1937 = vmatpush3.bf16.msra.mxu1 %v2229_v19  ;;  %v2272_v2 = vld [vmem:[#allocation13 + $0x10] sm:$0xff]   ;;  %v2273_v3 = vld [vmem:[#allocation7 + $0x20] sm:$0xff]   ;;  %v2274_v4 = vld [vmem:[#allocation13 + $0x18] sm:$0xff]  }
  0xfa   :  { %1938 = vmatprep.subr.bf16.mxu1 %v2232_v22  ;;  %v2275_v5 = vld [vmem:[#allocation7 + $0x28] sm:$0xff]   ;;  %v2276_v6 = vld [vmem:[#allocation13 + $0x20] sm:$0xff]   ;;  %v2277_v7 = vld [vmem:[#allocation7 + $0x30] sm:$0xff]  }
  0xfb   :  { %1917 = vmatpush3.bf16.msra.mxu0 %v2231_v21  ;;  %v2278_v8 = vld [vmem:[#allocation13 + $0x28] sm:$0xff]   ;;  %v2279_v9 = vld [vmem:[#allocation7 + $0x38] sm:$0xff]   ;;  %v2280_v10 = vld [vmem:[#allocation13 + $0x30] sm:$0xff]  }
  0xfc   :  { %1918 = vmatprep.subr.bf16.mxu0 %v2234_v24  ;;  %v2281_v11 = vld [vmem:[#allocation13 + $0x38] sm:$0xff]  }
  0xfd   :  { %1939 = vmatpush3.bf16.msra.mxu1 %v2233_v23  ;;  %v1782_v13 = vld [vmem:[%s3200_s10] ss:$0 sm:$0xff] }
  0xfe   :  { %1940 = vmatprep.subr.bf16.mxu1 %v2236_v26  ;;  %v2289_v51 = vld [vmem:[#allocation14 + $0x18] sm:$0xff]  }
  0xff   :  { %1919 = vmatpush3.bf16.msra.mxu0 %v2235_v25 }
 0x100   :  { %1920 = vmatprep.subr.bf16.mxu0 %v2238_v28 }
 0x101   :  { %1941 = vmatpush3.bf16.msra.mxu1 %v2237_v27 }
 0x102   :  { %1942 = vmatprep.subr.bf16.mxu1 %v2240_v30 }
 0x103   :  { %1921 = vmatpush3.bf16.msra.mxu0 %v2239_v29 }
 0x104   :  { %1950 = vmatprep.subr.bf16.mxu0 %v2244_v35  ;;  %v1840_v35 = vld [vmem:[%s3205_s15] ss:$0 sm:$0xff] }
 0x105   :  { %1943 = vmatpush3.bf16.msra.mxu1 %v2243_v34 }
 0x106   :  { %659 = vmatmul.mubr.bf16.vlgmr.msra.gmra.mrb[0].mxu0 %v1783_v32  ;;  %2037 = vmatprep.subr.bf16.mxu1 %v2721_v43 }
 0x107   :  { %1951 = vmatpush3.bf16.msra.mxu0 %v2247_v39  ;;  %738 = vmatprep.mubr.bf16.mxu0 %v1788_v53  ;;  %v2291_v53 = vld [vmem:[#allocation14 + $0x20] sm:$0xff]  }
 0x108   :  { %699 = vmatmul.mubr.bf16.vlgmr.msra.gmra.mrb[0].mxu1 %v1785_v37  ;;  %1952 = vmatprep.subr.bf16.mxu0 %v2248_v40 }
 0x109   :  { %2039 = vmatprep.mubr.msk.bf16.mxu1 %vm2722_vm0, %v2721_v43  ;;  %2038 = vmatpush3.bf16.msra.mxu1 %v2262_v50  ;;  %v2288_v50 = vld [vmem:[#allocation8 + $0x18] sm:$0xff]  }
 0x10a   :  { %2043 = vmatprep.subr.bf16.mxu1 %v2721_v43 }
 0x10b   :  { %1953 = vmatpush3.bf16.msra.mxu0 %v2249_v41 }
 0x10c   :  { %1954 = vmatprep.subr.bf16.mxu0 %v2250_v42 }
 0x10f   :  { %1955 = vmatpush3.bf16.msra.mxu0 %v2251_v44  ;;  %v2282_v44 = vld [vmem:[#allocation8] sm:$0xff]  }
 0x110   :  { %1956 = vmatprep.subr.bf16.mxu0 %v2252_v45  ;;  %2040 = vmatmul.mubr.msk.bf16.vlgmr.msra.gmra.mrb[4].mxu1 %vm622_vm1, %v2265_v54  ;;  %v2283_v45 = vld [vmem:[#allocation14] sm:$0xff]   ;;  %v2292_v54 = vld [vmem:[#allocation8 + $0x28] sm:$0xff]  }
 0x111   :  { %2059 = vmatprep.mubr.msk.bf16.mxu1 %vm2722_vm0, %v2721_v43  ;;  %2044 = vmatpush3.bf16.msra.mxu1 %v2266_v60 }
 0x112   :  { %2045 = vmatprep.subr.bf16.mxu1 %v2721_v43 }
 0x113   :  { %1957 = vmatpush3.bf16.msra.mxu0 %v2253_v46  ;;  %v2284_v46 = vld [vmem:[#allocation8 + $0x8] sm:$0xff]  }
 0x114   :  { %1958 = vmatprep.subr.bf16.mxu0 %v2254_v47  ;;  %v2285_v47 = vld [vmem:[#allocation14 + $0x8] sm:$0xff]  }
 0x115   :  { %2046 = vmatpush3.bf16.msra.mxu1 %v2267_v62 }
 0x116   :  { %2047 = vmatprep.subr.bf16.mxu1 %v2721_v43 }
 0x117   :  { %1959 = vmatpush3.bf16.msra.mxu0 %v2255_v48  ;;  %v2286_v48 = vld [vmem:[#allocation8 + $0x10] sm:$0xff]  }
 0x118   :  { %1960 = vmatprep.subr.bf16.mxu0 %v2256_v49  ;;  %v2287_v49 = vld [vmem:[#allocation14 + $0x10] sm:$0xff]  }
 0x119   :  { %2048 = vmatpush3.bf16.msra.mxu1 %v2269_v63  ;;  %v1850_v63 = vld [vmem:[%s3206_s16] ss:$0 sm:$0xff] }
 0x11a   :  { %2049 = vmatprep.subr.bf16.mxu1 %v2721_v43 }
 0x11b   :  { %1961 = vmatpush3.bf16.msra.mxu0 %v2257_v52  ;;  %v2290_v52 = vld [vmem:[#allocation8 + $0x20] sm:$0xff]  }
 0x11c   :  { %1962 = vmatprep.subr.bf16.mxu0 %v2258_v55  ;;  %v2293_v55 = vld [vmem:[#allocation14 + $0x28] sm:$0xff]  }
 0x11d   :  { %2050 = vmatpush3.bf16.msra.mxu1 %v2271_v1 }
 0x11e   :  { %2051 = vmatprep.subr.bf16.mxu1 %v2721_v43 }
 0x11f   :  { %1963 = vmatpush3.bf16.msra.mxu0 %v2259_v56  ;;  %v2294_v56 = vld [vmem:[#allocation8 + $0x30] sm:$0xff]  }
 0x120   :  { %1964 = vmatprep.subr.bf16.mxu0 %v2260_v57  ;;  %v2295_v57 = vld [vmem:[#allocation14 + $0x30] sm:$0xff]  }
 0x121   :  { %2052 = vmatpush3.bf16.msra.mxu1 %v2273_v3 }
 0x122   :  { %2053 = vmatprep.subr.bf16.mxu1 %v2721_v43 }
 0x123   :  { %1965 = vmatpush3.bf16.msra.mxu0 %v2261_v58  ;;  %v2296_v58 = vld [vmem:[#allocation8 + $0x38] sm:$0xff]  }
 0x124   :  { %2063 = vmatprep.subr.bf16.mxu0 %v2721_v43 }
 0x125   :  { %2054 = vmatpush3.bf16.msra.mxu1 %v2275_v5 }
 0x126   :  { %739 = vmatmul.mubr.bf16.vlgmr.msra.gmra.mrb[4].mxu0 %v1787_v59  ;;  %2055 = vmatprep.subr.bf16.mxu1 %v2721_v43  ;;  %v2297_v59 = vld [vmem:[#allocation14 + $0x38] sm:$0xff]  }
 0x127   :  { %2079 = vmatprep.mubr.msk.bf16.mxu0 %vm2722_vm0, %v2721_v43  ;;  %2064 = vmatpush3.bf16.msra.mxu0 %v2268_v61 }
 0x128   :  { %2065 = vmatprep.subr.bf16.mxu0 %v2721_v43 }
 0x129   :  { %2056 = vmatpush3.bf16.msra.mxu1 %v2277_v7 }
 0x12a   :  { %2057 = vmatprep.subr.bf16.mxu1 %v2721_v43 }
 0x12b   :  { %2066 = vmatpush3.bf16.msra.mxu0 %v2270_v0 }
 0x12c   :  { %2067 = vmatprep.subr.bf16.mxu0 %v2721_v43 }
 0x12d   :  { %2058 = vmatpush3.bf16.msra.mxu1 %v2279_v9 }
 0x12e   :  { %2083 = vmatprep.subr.bf16.mxu1 %v2721_v43 }
 0x12f   :  { %2068 = vmatpush3.bf16.msra.mxu0 %v2272_v2 }
 0x130   :  { %2069 = vmatprep.subr.bf16.mxu0 %v2721_v43 }
 0x133   :  { %2070 = vmatpush3.bf16.msra.mxu0 %v2274_v4 }
 0x134   :  { %2071 = vmatprep.subr.bf16.mxu0 %v2721_v43 }
 0x137   :  { %2072 = vmatpush3.bf16.msra.mxu0 %v2276_v6  ;;  %v1841_v6 = vld [vmem:[%s3201_s11] ss:$0 sm:$0xff] }
 0x138   :  { %2073 = vmatprep.subr.bf16.mxu0 %v2721_v43 }
 0x13b   :  { %2074 = vmatpush3.bf16.msra.mxu0 %v2278_v8 }
 0x13c   :  { %2075 = vmatprep.subr.bf16.mxu0 %v2721_v43 }
 0x13f   :  { %2076 = vmatpush3.bf16.msra.mxu0 %v2280_v10 }
 0x140   :  { %2077 = vmatprep.subr.bf16.mxu0 %v2721_v43 }
 0x143   :  { %2078 = vmatpush3.bf16.msra.mxu0 %v2281_v11 }
 0x144   :  { %2103 = vmatprep.subr.bf16.mxu0 %v2721_v43 }
 0x1d9   :  { %v1922_v12 = vpop.f32.mrb[0].mxu0 }
 0x1da   :  { %v1923_v14 = vpop.f32.mrb[1].mxu0 }
 0x1db   :  { %v1924_v15 = vadd.f32 %v1923_v14, %v1922_v12  ;;  %v1925_v16 = vpop.f32.mrb[2].mxu0  ;;  %v1944_v17 = vpop.f32.mrb[0].mxu1 }
 0x1dc   :  { %v1926_v18 = vpop.f32.mrb[3].mxu0  ;;  %v1945_v19 = vpop.f32.mrb[1].mxu1 }
 0x1dd   :  { %v661_v20 = vadd.f32 %v1924_v15, %v1782_v13  ;;  %v1946_v21 = vadd.f32 %v1945_v19, %v1944_v17  ;;  %v1947_v22 = vpop.f32.mrb[2].mxu1  ;;  %v2298_v15 = vld [vmem:[#allocation16] sm:$0xff]   ;;  %v2299_v17 = vld [vmem:[#allocation16 + $0x8] sm:$0xff]   ;;  %v2300_v18 = vld [vmem:[#allocation16 + $0x10] sm:$0xff]  }
 0x1de   :  { %v1948_v23 = vpop.f32.mrb[3].mxu1  ;;  %v2301_v19 = vld [vmem:[#allocation16 + $0x18] sm:$0xff]   ;;  %v2304_v22 = vld [vmem:[#allocation16 + $0x30] sm:$0xff]  }
 0x1df   :  { %v701_v24 = vadd.f32 %v1946_v21, %v661_v20  ;;  %v2302_v20 = vld [vmem:[#allocation16 + $0x20] sm:$0xff]   ;;  %v2303_v21 = vld [vmem:[#allocation16 + $0x28] sm:$0xff]   ;;  %v2305_v23 = vld [vmem:[#allocation16 + $0x38] sm:$0xff]  }
 0x1e3   :  { %v780_v25 = vpop.f32.mrb[4].mxu1 }
 0x1e4   :  { %v2041_v26 = vpop.f32.mrb[5].mxu1 }
 0x1e5   :  { %v783_v27 = vpop.f32.mrb[6].mxu1  ;;  %v2308_v26 = vld [vmem:[#allocation10 + $0x10] sm:$0xff]  }
 0x1e6   :  { %v2042_v28 = vpop.f32.mrb[7].mxu1  ;;  %v2309_v27 = vld [vmem:[#allocation10 + $0x18] sm:$0xff]  }
 0x1e7   :  { %v2310_v28 = vld [vmem:[#allocation10 + $0x20] sm:$0xff]  }
 0x1f9   :  { %v1966_v29 = vpop.f32.mrb[4].mxu0 }
 0x1fa   :  { %v1967_v30 = vpop.f32.mrb[5].mxu0 }
 0x1fb   :  { %v1968_v31 = vadd.f32 %v1967_v30, %v1966_v29  ;;  %v1969_v32 = vpop.f32.mrb[6].mxu0  ;;  %v2311_v29 = vld [vmem:[#allocation10 + $0x28] sm:$0xff]   ;;  %v2312_v30 = vld [vmem:[#allocation10 + $0x30] sm:$0xff]  }
 0x1fc   :  { %v1970_v33 = vpop.f32.mrb[7].mxu0 }
 0x1fd   :  { %v741_v34 = vadd.f32 %v1968_v31, %v701_v24  ;;  %v2306_v24 = vld [vmem:[#allocation10] sm:$0xff]   ;;  %v2313_v31 = vld [vmem:[#allocation10 + $0x38] sm:$0xff]  }
 0x1ff   :  { %v781_v36 = vadd.f32 %v780_v25, %v741_v34  ;;  %v2307_v25 = vld [vmem:[#allocation10 + $0x8] sm:$0xff]  }
 0x201   :  { %v793_v37 = vmul.f32 %v1840_v35, %v781_v36  ;;  %v1868_v35 = vld [vmem:[%s3207_s17] ss:$0 sm:$0xff] }
 0x203   :  { %2322 = vtanh.f32 %v793_v37 }
 0x20d   :  { %v2323_v38 = vpop.eup %2322 }
 0x20e   :  { %1604 = vst [vmem:[#allocation20] sm:$0xff] %v2323_v38  ;;  %v797_v39 = vpack.c.bf16 %v2323_v38, %v2323_v38  ;;  %v795_v40 = vmul.f32 %v2323_v38, %v2323_v38 }
 0x210   :  { %2060 = vmatmul.mubr.bf16.vlgmr.msra.gmra.mrb[8].mxu1 %v797_v39  ;;  %v796_v41 = vsub.f32 1.0, %v795_v40 }
 0x211   :  { %2099 = vmatprep.mubr.msk.bf16.mxu1 %vm2722_vm0, %v2721_v43  ;;  %2084 = vmatpush3.bf16.msra.mxu1 %v2282_v44 }
 0x212   :  { %v909_v42 = vpack.c.bf16 %v796_v41, %v796_v41  ;;  %2085 = vmatprep.subr.bf16.mxu1 %v2721_v43 }
 0x214   :  { %2080 = vmatmul.mubr.bf16.vlgmr.msra.gmra.mrb[8].mxu0 %v909_v42  ;;  %v1859_v42 = vld [vmem:[%s3202_s12] ss:$0 sm:$0xff] }
 0x215   :  { %2119 = vmatprep.mubr.msk.bf16.mxu0 %vm2722_vm0, %v2721_v43  ;;  %2104 = vmatpush3.bf16.msra.mxu0 %v2283_v45 }
 0x216   :  { %2086 = vmatpush3.bf16.msra.mxu1 %v2284_v46  ;;  %2105 = vmatprep.subr.bf16.mxu0 %v2721_v43 }
 0x217   :  { %2087 = vmatprep.subr.bf16.mxu1 %v2721_v43 }
 0x219   :  { %2106 = vmatpush3.bf16.msra.mxu0 %v2285_v47 }
 0x21a   :  { %2088 = vmatpush3.bf16.msra.mxu1 %v2286_v48  ;;  %2107 = vmatprep.subr.bf16.mxu0 %v2721_v43 }
 0x21b   :  { %2089 = vmatprep.subr.bf16.mxu1 %v2721_v43 }
 0x21d   :  { %2108 = vmatpush3.bf16.msra.mxu0 %v2287_v49  ;;  %v2314_v49 = vld [vmem:[#allocation11] sm:$0xff]  }
 0x21e   :  { %2090 = vmatpush3.bf16.msra.mxu1 %v2288_v50  ;;  %2109 = vmatprep.subr.bf16.mxu0 %v2721_v43 }
 0x21f   :  { %2091 = vmatprep.subr.bf16.mxu1 %v2721_v43 }
 0x221   :  { %2110 = vmatpush3.bf16.msra.mxu0 %v2289_v51  ;;  %v2315_v51 = vld [vmem:[#allocation11 + $0x8] sm:$0xff]  }
 0x222   :  { %2092 = vmatpush3.bf16.msra.mxu1 %v2290_v52  ;;  %2111 = vmatprep.subr.bf16.mxu0 %v2721_v43 }
 0x223   :  { %2093 = vmatprep.subr.bf16.mxu1 %v2721_v43 }
 0x225   :  { %2112 = vmatpush3.bf16.msra.mxu0 %v2291_v53 }
 0x226   :  { %2094 = vmatpush3.bf16.msra.mxu1 %v2292_v54  ;;  %2113 = vmatprep.subr.bf16.mxu0 %v2721_v43 }
 0x227   :  { %2095 = vmatprep.subr.bf16.mxu1 %v2721_v43 }
 0x229   :  { %2114 = vmatpush3.bf16.msra.mxu0 %v2293_v55  ;;  %v2316_v55 = vld [vmem:[#allocation11 + $0x10] sm:$0xff]  }
 0x22a   :  { %2096 = vmatpush3.bf16.msra.mxu1 %v2294_v56  ;;  %2115 = vmatprep.subr.bf16.mxu0 %v2721_v43 }
 0x22b   :  { %2097 = vmatprep.subr.bf16.mxu1 %v2721_v43 }
 0x22d   :  { %2116 = vmatpush3.bf16.msra.mxu0 %v2295_v57  ;;  %v2317_v57 = vld [vmem:[#allocation11 + $0x18] sm:$0xff]  }
 0x22e   :  { %2098 = vmatpush3.bf16.msra.mxu1 %v2296_v58  ;;  %2117 = vmatprep.subr.bf16.mxu0 %v2721_v43  ;;  %v2318_v58 = vld [vmem:[#allocation11 + $0x20] sm:$0xff]  }
 0x22f   :  { %2123 = vmatprep.subr.bf16.mxu1 %v2721_v43 }
 0x231   :  { %2118 = vmatpush3.bf16.msra.mxu0 %v2297_v59  ;;  %v2319_v59 = vld [vmem:[#allocation11 + $0x28] sm:$0xff]  }
 0x232   :  { %2143 = vmatprep.subr.bf16.mxu0 %v2721_v43 }
 0x2e3   :  { %v903_v60 = vpop.f32.mrb[8].mxu1 }
 0x2e4   :  { %v2061_v61 = vpop.f32.mrb[9].mxu1  ;;  %v904_v7 = vadd.f32 %v1841_v6, %v903_v60  ;;  %v2320_v60 = vld [vmem:[#allocation11 + $0x30] sm:$0xff]  }
 0x2e5   :  { %v906_v62 = vpop.f32.mrb[10].mxu1  ;;  %v2321_v61 = vld [vmem:[#allocation11 + $0x38] sm:$0xff]  }
 0x2e6   :  { %v2062_v0 = vpop.f32.mrb[11].mxu1  ;;  %v1021_v8 = vmul.f32 0.7978846, %v904_v7  ;;  %v1886_v62 = vld [vmem:[%s3208_s18] ss:$0 sm:$0xff] }
 0x2e7   :  { %v1015_v1 = vpop.f32.mrb[8].mxu0  ;;  %v1877_v0 = vld [vmem:[%s3203_s13] ss:$0 sm:$0xff] }
 0x2e8   :  { %v1016_v2 = vadd.f32 %v1850_v63, %v1015_v1  ;;  %v2081_v3 = vpop.f32.mrb[9].mxu0 }
 0x2e9   :  { %v1018_v4 = vpop.f32.mrb[10].mxu0 }
 0x2ea   :  { %2324 = vrsqrt.f32 %v1016_v2  ;;  %v2082_v5 = vpop.f32.mrb[11].mxu0 }
 0x2f4   :  { %v2325_v9 = vpop.eup %2324 }
 0x2f5   :  { %v1023_v10 = vmul.f32 %v2325_v9, %v1021_v8 }
 0x2f7   :  { %2326 = vtanh.f32 %v1023_v10 }
 0x301   :  { %v2327_v11 = vpop.eup %2326 }
 0x302   :  { %1605 = vst [vmem:[#allocation21] sm:$0xff] %v2327_v11  ;;  %v1027_v12 = vpack.c.bf16 %v2327_v11, %v2327_v11  ;;  %v1025_v13 = vmul.f32 %v2327_v11, %v2327_v11  ;;  %v1895_v11 = vld [vmem:[%s3204_s14] ss:$0 sm:$0xff] }
 0x304   :  { %2100 = vmatmul.mubr.bf16.vlgmr.msra.gmra.mrb[12].mxu1 %v1027_v12  ;;  %v1026_v14 = vsub.f32 1.0, %v1025_v13 }
 0x305   :  { %2139 = vmatprep.mubr.msk.bf16.mxu1 %vm2722_vm0, %v2721_v43  ;;  %2124 = vmatpush3.bf16.msra.mxu1 %v2306_v24 }
 0x306   :  { %v1139_v16 = vpack.c.bf16 %v1026_v14, %v1026_v14  ;;  %2125 = vmatprep.subr.bf16.mxu1 %v2721_v43 }
 0x308   :  { %2120 = vmatmul.mubr.bf16.vlgmr.msra.gmra.mrb[12].mxu0 %v1139_v16 }
 0x309   :  { %2144 = vmatpush3.bf16.msra.mxu0 %v2298_v15  ;;  %2159 = vmatprep.mubr.msk.bf16.mxu0 %vm2722_vm0, %v2721_v43 }
 0x30a   :  { %2145 = vmatprep.subr.bf16.mxu0 %v2721_v43  ;;  %2126 = vmatpush3.bf16.msra.mxu1 %v2307_v25 }
 0x30b   :  { %2127 = vmatprep.subr.bf16.mxu1 %v2721_v43 }
 0x30d   :  { %2146 = vmatpush3.bf16.msra.mxu0 %v2299_v17  ;;  %v2723_v17 = vmov 0  }
 0x30e   :  { %2147 = vmatprep.subr.bf16.mxu0 %v2721_v43  ;;  %2128 = vmatpush3.bf16.msra.mxu1 %v2308_v26 }
 0x30f   :  { %2129 = vmatprep.subr.bf16.mxu1 %v2721_v43  ;;  %2208 = vset.pattern.permute.xlu1 %v2723_v17 }
 0x310   :  { %2209 = vset.pattern.permute.xlu0 %v2723_v17 }
 0x311   :  { %2148 = vmatpush3.bf16.msra.mxu0 %v2300_v18  ;;  %v1611_v18 = vlaneseq }
 0x312   :  { %2149 = vmatprep.subr.bf16.mxu0 %v2721_v43  ;;  %2130 = vmatpush3.bf16.msra.mxu1 %v2309_v27  ;;  %v198_v27 = vld [vmem:[%s3250_s27] sm:$0xff] }
 0x313   :  { %2131 = vmatprep.subr.bf16.mxu1 %v2721_v43 }
 0x315   :  { %2150 = vmatpush3.bf16.msra.mxu0 %v2301_v19  ;;  %v3094_v19 = vand.u32 127, %v1611_v18 }
 0x316   :  { %2151 = vmatprep.subr.bf16.mxu0 %v2721_v43  ;;  %2132 = vmatpush3.bf16.msra.mxu1 %v2310_v28 }
 0x317   :  { %2133 = vmatprep.subr.bf16.mxu1 %v2721_v43 }
 0x319   :  { %2152 = vmatpush3.bf16.msra.mxu0 %v2302_v20 }
 0x31a   :  { %2153 = vmatprep.subr.bf16.mxu0 %v2721_v43  ;;  %2134 = vmatpush3.bf16.msra.mxu1 %v2311_v29 }
 0x31b   :  { %2135 = vmatprep.subr.bf16.mxu1 %v2721_v43 }
 0x31d   :  { %2154 = vmatpush3.bf16.msra.mxu0 %v2303_v21 }
 0x31e   :  { %2155 = vmatprep.subr.bf16.mxu0 %v2721_v43  ;;  %2136 = vmatpush3.bf16.msra.mxu1 %v2312_v30 }
 0x31f   :  { %2137 = vmatprep.subr.bf16.mxu1 %v2721_v43 }
 0x321   :  { %2156 = vmatpush3.bf16.msra.mxu0 %v2304_v22 }
 0x322   :  { %2157 = vmatprep.subr.bf16.mxu0 %v2721_v43  ;;  %2138 = vmatpush3.bf16.msra.mxu1 %v2313_v31 }
 0x323   :  { %2163 = vmatprep.subr.bf16.mxu1 %v2721_v43 }
 0x325   :  { %2158 = vmatpush3.bf16.msra.mxu0 %v2305_v23 }
 0x328   :  { %2160 = vmatmul.mubr.bf16.vlgmr.msra.gmra.mrb[16].mxu0 %v1139_v16 }
 0x3d7   :  { %v1133_v32 = vpop.f32.mrb[12].mxu1 }
 0x3d8   :  { %v2101_v33 = vpop.f32.mrb[13].mxu1  ;;  %v1134_v44 = vadd.f32 %v1859_v42, %v1133_v32 }
 0x3d9   :  { %v1136_v34 = vpop.f32.mrb[14].mxu1 }
 0x3da   :  { %v2102_v36 = vpop.f32.mrb[15].mxu1  ;;  %v1251_v45 = vmul.f32 0.7978846, %v1134_v44 }
 0x3db   :  { %v1245_v37 = vpop.f32.mrb[12].mxu0 }
 0x3dc   :  { %v1246_v38 = vadd.f32 %v1868_v35, %v1245_v37  ;;  %v2121_v39 = vpop.f32.mrb[13].mxu0 }
 0x3dd   :  { %v1248_v40 = vpop.f32.mrb[14].mxu0 }
 0x3de   :  { %2328 = vrsqrt.f32 %v1246_v38  ;;  %v2122_v41 = vpop.f32.mrb[15].mxu0 }
 0x3e8   :  { %v2329_v46 = vpop.eup %2328 }
 0x3e9   :  { %v1253_v47 = vmul.f32 %v2329_v46, %v1251_v45 }
 0x3eb   :  { %2330 = vtanh.f32 %v1253_v47 }
 0x3f5   :  { %v2331_v48 = vpop.eup %2330 }
 0x3f6   :  { %1606 = vst [vmem:[#allocation23] sm:$0xff] %v2331_v48  ;;  %v1255_v50 = vpack.c.bf16 %v2331_v48, %v2331_v48 }
 0x3f8   :  { %2140 = vmatmul.mubr.bf16.vlgmr.msra.gmra.mrb[16].mxu1 %v1255_v50 }
 0x3f9   :  { %2164 = vmatpush3.bf16.msra.mxu1 %v2314_v49  ;;  %2179 = vmatprep.mubr.msk.bf16.mxu1 %vm2722_vm0, %v2721_v43 }
 0x3fa   :  { %2165 = vmatprep.subr.bf16.mxu1 %v2721_v43 }
 0x3fb   :  { %v1472_v52 = vpop.f32.mrb[16].mxu0 }
 0x3fc   :  { %v2161_v53 = vpop.f32.mrb[17].mxu0  ;;  %v1473_v63 = vadd.f32 %v1886_v62, %v1472_v52 }
 0x3fd   :  { %v1475_v54 = vpop.f32.mrb[18].mxu0  ;;  %2166 = vmatpush3.bf16.msra.mxu1 %v2315_v51 }
 0x3fe   :  { %v2162_v56 = vpop.f32.mrb[19].mxu0  ;;  %2167 = vmatprep.subr.bf16.mxu1 %v2721_v43  ;;  %2332 = vrsqrt.f32 %v1473_v63 }
 0x401   :  { %2168 = vmatpush3.bf16.msra.mxu1 %v2316_v55 }
 0x402   :  { %2169 = vmatprep.subr.bf16.mxu1 %v2721_v43 }
 0x405   :  { %2170 = vmatpush3.bf16.msra.mxu1 %v2317_v57 }
 0x406   :  { %2171 = vmatprep.subr.bf16.mxu1 %v2721_v43 }
 0x408   :  { %v2333_v7 = vpop.eup %2332 }
 0x409   :  { %2172 = vmatpush3.bf16.msra.mxu1 %v2318_v58 }
 0x40a   :  { %2173 = vmatprep.subr.bf16.mxu1 %v2721_v43 }
 0x40d   :  { %2174 = vmatpush3.bf16.msra.mxu1 %v2319_v59 }
 0x40e   :  { %2175 = vmatprep.subr.bf16.mxu1 %v2721_v43 }
 0x411   :  { %2176 = vmatpush3.bf16.msra.mxu1 %v2320_v60 }
 0x412   :  { %2177 = vmatprep.subr.bf16.mxu1 %v2721_v43 }
 0x415   :  { %2178 = vmatpush3.bf16.msra.mxu1 %v2321_v61 }
 0x4cb   :  { %v1361_v1 = vpop.f32.mrb[16].mxu1 }
 0x4cc   :  { %v1362_v2 = vadd.f32 %v1877_v0, %v1361_v1  ;;  %v2141_v3 = vpop.f32.mrb[17].mxu1 }
 0x4cd   :  { %v1364_v4 = vpop.f32.mrb[18].mxu1 }
 0x4ce   :  { %v1478_v5 = vmul.f32 0.7978846, %v1362_v2  ;;  %v2142_v6 = vpop.f32.mrb[19].mxu1 }
 0x4d0   :  { %v1480_v8 = vmul.f32 %v2333_v7, %v1478_v5 }
 0x4d2   :  { %2334 = vtanh.f32 %v1480_v8 }
 0x4dc   :  { %v2335_v9 = vpop.eup %2334 }
 0x4dd   :  { %1607 = vst [vmem:[#allocation24] sm:$0xff] %v2335_v9  ;;  %v1482_v10 = vpack.c.bf16 %v2335_v9, %v2335_v9 }
 0x4df   :  { %2180 = vmatmul.mubr.bf16.vlgmr.msra.gmra.mrb[20].mxu1 %v1482_v10 }
 0x5b2   :  { %v1588_v12 = vpop.f32.mrb[20].mxu1 }
 0x5b3   :  { %v1589_v13 = vadd.f32 %v1895_v11, %v1588_v12  ;;  %v2181_v14 = vpop.f32.mrb[21].mxu1 }
 0x5b4   :  { %v1591_v15 = vpop.f32.mrb[22].mxu1 }
 0x5b5   :  { %1608 = vst [vmem:[#allocation17] sm:$0xff] %v1589_v13  ;;  %1594 = vmax.xlane.f32.xlu0 %v1589_v13  ;;  %v2182_v16 = vpop.f32.mrb[23].mxu1 }
 0x642   :  { %v1595_v20 = vpop.xlane.xlu0 %1594 }
 0x643   :  { %v1596_v21 = vsub.f32 %v1589_v13, %v1595_v20  ;;  %vm1642_vm2 = vcmp.ge.f32.partialorder %v1589_v13, %v1595_v20 }
 0x644   :  { %v1643_v22 = vsel %vm1642_vm2, %v3094_v19, 128 }
 0x645   :  { %v1597_v23 = vmul.f32 1.442695, %v1596_v21  ;;  %v1645_v24 = vshra.s32 %v1643_v22, 16  ;;  %v1644_v28 = vand.u32 65535, %v1643_v22 }
 0x647   :  { %2336 = vpow2.f32 %v1597_v23  ;;  %v1647_v25 = vcvt.s32.f32 %v1645_v24  ;;  %v1646_v30 = vcvt.s32.f32 %v1644_v28 }
 0x649   :  { %1648 = vmin.xlane.f32.xlu1 %v1647_v25 }
 0x651   :  { %v2337_v26 = vpop.eup %2336 }
 0x652   :  { %1599 = vadd.xlane.f32.xlu0 %v2337_v26 }
 0x65a   :  { %1621 = vperm.xlu1 %2208, %v198_v27  }
 0x6d6   :  { %v1649_v29 = vpop.xlane.xlu1 %1648 }
 0x6d7   :  { %vm1650_vm3 = vcmp.eq.f32.partialorder %v1647_v25, %v1649_v29  ;;  %v1655_v40 = vcvt.f32.s32 %v1649_v29 }
 0x6d8   :  { %v1651_v31 = vsel %vm1650_vm3, %v1646_v30, inf }
 0x6d9   :  { %1652 = vmin.xlane.f32.xlu0 %v1651_v31  ;;  %v1656_v42 = vshll.u32 %v1655_v40, 16 }
 0x6da   :  { %v1622_v33 = vpop.permute.xlu1 %1621 }
 0x6db   :  { %vm1623_vm4 = vcmp.eq.s32.totalorder %v3094_v19, %v1622_v33 }
 0x6dc   :  { %v1904_v36 = vsel %vm1623_vm4, 1.0, %v2721_v43 }
 0x6df   :  { %v1600_v32 = vpop.xlane.xlu0 %1599 }
 0x6e0   :  { %2338 = vlog2.f32 %v1600_v32 }
 0x6ea   :  { %v2339_v34 = vpop.eup %2338 }
 0x6eb   :  { %v1602_v35 = vmul.f32 0.6931472, %v2339_v34 }
 0x6ed   :  { %v1603_v37 = vsub.f32 %v1596_v21, %v1602_v35 }
 0x6ef   :  { %v1626_v38 = vmul.f32 %v1904_v36, %v1603_v37  ;;  %1609 = vst [vmem:[#allocation18] sm:$0xff] %v1603_v37 }
 0x6f1   :  { %1627 = vadd.xlane.f32.xlu0 %v1626_v38 }
 0x766   :  { %v1653_v39 = vpop.xlane.xlu0 %1652 }
 0x767   :  { %v1654_v41 = vcvt.f32.s32 %v1653_v39 }
 0x769   :  { %v1657_v44 = vadd.s32 %v1656_v42, %v1654_v41 }
 0x76b   :  { %vm1658_vm5 = vcmp.eq.s32.totalorder %v1657_v44, %v198_v27 }
 0x76c   :  { %v1905_v48 = vsel %vm1658_vm5, 1.0, %v2721_v43 }
 0x76d   :  { %v1662_v49 = vsel %vm1631_vm6, %v1905_v48, 0.0 }
 0x77e   :  { %v1628_v45 = vpop.xlane.xlu0 %1627 }
 0x77f   :  { %v1629_v46 = vsub.f32 0.0, %v1628_v45 }
 0x781   :  { %v1632_v47 = vsel %vm1631_vm6, %v1629_v46, 0.0 }
 0x782   :  { %1633 = vadd.xlane.f32.xlu0 %v1632_v47 }
 0x786   :  { %1663 = vadd.xlane.f32.xlu0 %v1662_v49 }
 0x787   :  { %2549 = shalt.err (!%p2546_p6)
}
 0x788   :  { %s2550_s9 = scalar_lea.hbm %s3210_s20, 128 }
 0x789   :  { %p2551_p7 = scmp.ne.s32.totalorder %s3210_s20, %s2550_s9  ;;  %p2554_p8 = scmp.lt.u32.totalorder %s2550_s9, %s3210_s20 }
 0x78b   :  { %p2556_p9 = pnand %p2554_p8, %p2551_p7 }
 0x78d   :  { %2559 = shalt.err (!%p2556_p9)
}
 0x78e   :  { %1701 = dma.vmem_to_hbm [thread:$0]  %s1699_s21, 128, %s3210_s20, [#allocation19]  }
 0x78f   :  { %s2560_s11 = scalar_lea.vmem %s1719_s30, 128  ;;  %p2565_p11 = scmp.lt.s32.totalorder %s1719_s30, %s1719_s30 }
 0x790   :  { %p2561_p10 = scmp.ne.s32.totalorder %s1719_s30, %s2560_s11  ;;  %p2566_p12 = scmp.lt.s32.totalorder %s2560_s11, %s2560_s11 }
 0x792   :  { %p2567_p13 = por %p2566_p12, %p2565_p11 }
 0x794   :  { %p2568_p0 = pnand %p2567_p13, %p2561_p10 }
 0x796   :  { %2571 = shalt.err (!%p2568_p0)
}
 0x797   :  { %s2572_s25 = scalar_lea.hbm %s3212_s22, 128 }
 0x798   :  { %p2573_p1 = scmp.ne.s32.totalorder %s3212_s22, %s2572_s25  ;;  %p2576_p2 = scmp.lt.u32.totalorder %s2572_s25, %s3212_s22 }
 0x79a   :  { %p2578_p3 = pnand %p2576_p2, %p2573_p1 }
 0x79c   :  { %2581 = shalt.err (!%p2578_p3)
}
 0x79d   :  { %1721 = dma.vmem_to_hbm [thread:$0]  %s1719_s30, 128, %s3212_s22, [#allocation22]  }
 0x79e   :  { %s2726_s0 = smov [#allocation24]   ;;  %s2727_s14 = smov [#allocation17]  }
 0x79f   :  { %s1738_s13 = sshll.u32 %s2726_s0, 4  ;;  %s1688_s27 = sshll.u32 %s2727_s14, 4  ;;  %s1739_s13 = int_to_ptr.vmem [resolvable:$true] %s1738_s13  ;;  %s1689_s27 = int_to_ptr.vmem [resolvable:$true] %s1688_s27 }
 0x7a0   :  { %s2582_s4 = scalar_lea.vmem %s1739_s13, 128  ;;  %p2587_p5 = scmp.lt.s32.totalorder %s1739_s13, %s1739_s13 }
 0x7a1   :  { %p2583_p4 = scmp.ne.s32.totalorder %s1739_s13, %s2582_s4  ;;  %p2588_p6 = scmp.lt.s32.totalorder %s2582_s4, %s2582_s4 }
 0x7a3   :  { %p2589_p7 = por %p2588_p6, %p2587_p5 }
 0x7a5   :  { %p2590_p8 = pnand %p2589_p7, %p2583_p4 }
 0x7a7   :  { %2593 = shalt.err (!%p2590_p8)
}
 0x7a8   :  { %s2594_s5 = scalar_lea.hbm %s3214_s24, 128 }
 0x7a9   :  { %p2595_p9 = scmp.ne.s32.totalorder %s3214_s24, %s2594_s5  ;;  %p2598_p10 = scmp.lt.u32.totalorder %s2594_s5, %s3214_s24 }
 0x7ab   :  { %p2600_p11 = pnand %p2598_p10, %p2595_p9 }
 0x7ad   :  { %2603 = shalt.err (!%p2600_p11)
}
 0x7ae   :  { %1741 = dma.vmem_to_hbm [thread:$0]  %s1739_s13, 128, %s3214_s24, [#allocation25]  }
 0x7af   :  { %s2604_s2 = scalar_lea.vmem %s1689_s27, 128  ;;  %p2609_p13 = scmp.lt.s32.totalorder %s1689_s27, %s1689_s27 }
 0x7b0   :  { %p2605_p12 = scmp.ne.s32.totalorder %s1689_s27, %s2604_s2  ;;  %p2610_p0 = scmp.lt.s32.totalorder %s2604_s2, %s2604_s2 }
 0x7b2   :  { %p2611_p1 = por %p2610_p0, %p2609_p13 }
 0x7b4   :  { %p2612_p2 = pnand %p2611_p1, %p2605_p12 }
 0x7b6   :  { %2615 = shalt.err (!%p2612_p2)
}
 0x7b7   :  { %s2616_s6 = scalar_lea.hbm %s3209_s19, 128 }
 0x7b8   :  { %p2617_p3 = scmp.ne.s32.totalorder %s3209_s19, %s2616_s6  ;;  %p2620_p4 = scmp.lt.u32.totalorder %s2616_s6, %s3209_s19 }
 0x7ba   :  { %p2622_p5 = pnand %p2620_p4, %p2617_p3 }
 0x7bc   :  { %2625 = shalt.err (!%p2622_p5)
}
 0x7bd   :  { %1691 = dma.vmem_to_hbm [thread:$0]  %s1689_s27, 128, %s3209_s19, [#allocation4]  }
 0x7be   :  { %s2728_s12 = smov [#allocation20]   ;;  %s2729_s1 = smov [#allocation23]  }
 0x7bf   :  { %s1708_s17 = sshll.u32 %s2728_s12, 4  ;;  %s1728_s7 = sshll.u32 %s2729_s1, 4  ;;  %s1709_s17 = int_to_ptr.vmem [resolvable:$true] %s1708_s17  ;;  %s1729_s7 = int_to_ptr.vmem [resolvable:$true] %s1728_s7 }
 0x7c0   :  { %s2626_s20 = scalar_lea.vmem %s1709_s17, 128  ;;  %p2631_p7 = scmp.lt.s32.totalorder %s1709_s17, %s1709_s17 }
 0x7c1   :  { %p2627_p6 = scmp.ne.s32.totalorder %s1709_s17, %s2626_s20  ;;  %p2632_p8 = scmp.lt.s32.totalorder %s2626_s20, %s2626_s20 }
 0x7c3   :  { %p2633_p9 = por %p2632_p8, %p2631_p7 }
 0x7c5   :  { %p2634_p10 = pnand %p2633_p9, %p2627_p6 }
 0x7c7   :  { %2637 = shalt.err (!%p2634_p10)
}
 0x7c8   :  { %s3251_s13 = sld [smem:[#allocation46_spill]] }
 0x7ce   :  { %s2638_s14 = scalar_lea.hbm %s3251_s13, 128 }
 0x7cf   :  { %p2639_p11 = scmp.ne.s32.totalorder %s3251_s13, %s2638_s14  ;;  %p2642_p12 = scmp.lt.u32.totalorder %s2638_s14, %s3251_s13 }
 0x7d1   :  { %p2644_p13 = pnand %p2642_p12, %p2639_p11 }
 0x7d3   :  { %2647 = shalt.err (!%p2644_p13)
}
 0x7d4   :  { %1711 = dma.vmem_to_hbm [thread:$0]  %s1709_s17, 128, %s3251_s13, [#allocation19]  }
 0x7d5   :  { %s2648_s8 = scalar_lea.vmem %s1729_s7, 128  ;;  %p2653_p1 = scmp.lt.s32.totalorder %s1729_s7, %s1729_s7 }
 0x7d6   :  { %p2649_p0 = scmp.ne.s32.totalorder %s1729_s7, %s2648_s8  ;;  %p2654_p2 = scmp.lt.s32.totalorder %s2648_s8, %s2648_s8 }
 0x7d8   :  { %p2655_p3 = por %p2654_p2, %p2653_p1 }
 0x7da   :  { %p2656_p4 = pnand %p2655_p3, %p2649_p0 }
 0x7dc   :  { %2659 = shalt.err (!%p2656_p4)
}
 0x7dd   :  { %s3252_s30 = sld [smem:[#allocation47_spill]] }
 0x7e3   :  { %s2660_s9 = scalar_lea.hbm %s3252_s30, 128 }
 0x7e4   :  { %p2661_p5 = scmp.ne.s32.totalorder %s3252_s30, %s2660_s9  ;;  %p2664_p6 = scmp.lt.u32.totalorder %s2660_s9, %s3252_s30 }
 0x7e6   :  { %p2666_p7 = pnand %p2664_p6, %p2661_p5 }
 0x7e8   :  { %2669 = shalt.err (!%p2666_p7)
}
 0x7e9   :  { %1731 = dma.vmem_to_hbm [thread:$0]  %s1729_s7, 128, %s3252_s30, [#allocation22]   ;;  %v1612_v63 = vshrl.u32 %v1611_v18, 7  ;;  %vm1675_vm8 = vcmp.eq.s32.totalorder %v3094_v19, 1  ;;  %vm1673_vm9 = vcmp.eq.s32.totalorder %v3094_v19, 0 }
 0x7ea   :  { %s2730_s16 = smov [#allocation26]  }
 0x7eb   :  { %vm1672_vm7 = vcmp.eq.s32.totalorder %v1612_v63, 0  ;;  %s1748_s3 = sshll.u32 %s2730_s16, 4  ;;  %s1749_s3 = int_to_ptr.vmem [resolvable:$true] %s1748_s3 }
 0x7ec   :  { %vm1676_vm10 = vmand %vm1672_vm7, %vm1675_vm8  ;;  %s2670_s25 = scalar_lea.vmem %s1749_s3, 128  ;;  %p2675_p9 = scmp.lt.s32.totalorder %s1749_s3, %s1749_s3 }
 0x7ed   :  { %vm1674_vm11 = vmand %vm1672_vm7, %vm1673_vm9  ;;  %p2671_p8 = scmp.ne.s32.totalorder %s1749_s3, %s2670_s25  ;;  %p2676_p10 = scmp.lt.s32.totalorder %s2670_s25, %s2670_s25 }
 0x7ef   :  { %p2677_p11 = por %p2676_p10, %p2675_p9 }
 0x7f1   :  { %p2678_p12 = pnand %p2677_p11, %p2671_p8 }
 0x80f   :  { %v1634_v43 = vpop.xlane.xlu0 %1633 }
 0x810   :  { %v1635_v50 = vrot.slane %v1634_v43, 4 }
 0x812   :  { %v1636_v51 = vadd.f32 %v1635_v50, %v1634_v43 }
 0x813   :  { %v1664_v52 = vpop.xlane.xlu0 %1663 }
 0x814   :  { %v1637_v53 = vrot.slane %v1636_v51, 2  ;;  %v1665_v54 = vrot.slane %v1664_v52, 4 }
 0x816   :  { %v1666_v55 = vadd.f32 %v1665_v54, %v1664_v52  ;;  %v1638_v56 = vadd.f32 %v1637_v53, %v1636_v51 }
 0x818   :  { %v1667_v57 = vrot.slane %v1666_v55, 2  ;;  %v1639_v58 = vrot.slane %v1638_v56, 1 }
 0x81a   :  { %v1668_v59 = vadd.f32 %v1667_v57, %v1666_v55  ;;  %v1640_v60 = vadd.f32 %v1639_v58, %v1638_v56 }
 0x81c   :  { %2183 = vpush %v1640_v60  ;;  %v1669_v61 = vrot.slane %v1668_v59, 1 }
 0x81e   :  { %v1670_v62 = vadd.f32 %v1669_v61, %v1668_v59 }
 0x820   :  { %2185 = vpush %v1670_v62 }
 0x84d   :  { %s2184_s11 = spop %2183 }
 0x84e   :  { %v1679_v1 = vstv %s2184_s11 }
 0x851   :  { %s2186_s24 = spop %2185 }
 0x852   :  { %v1677_v0 = vstv %s2186_s24 }
 0x853   :  { %v1678_v2 = vsel %vm1676_vm10, %v1677_v0, 0.0 }
 0x854   :  { %v1680_v3 = vsel %vm1674_vm11, %v1679_v1, %v1678_v2 }
 0x855   :  { %1681 = vst [vmem:[#allocation26] sm:$0xff] %v1680_v3 }
 0x856   :  { %2681 = shalt.err (!%p2678_p12)
}
 0x857   :  { %s3253_s1 = sld [smem:[#allocation48_spill]] }
 0x85d   :  { %s2682_s7 = scalar_lea.hbm %s3253_s1, 128 }
 0x85e   :  { %p2683_p13 = scmp.ne.s32.totalorder %s3253_s1, %s2682_s7  ;;  %p2686_p0 = scmp.lt.u32.totalorder %s2682_s7, %s3253_s1 }
 0x860   :  { %p2688_p1 = pnand %p2686_p0, %p2683_p13 }
 0x862   :  { %2691 = shalt.err (!%p2688_p1)
}
 0x863   :  { %1751 = dma.vmem_to_hbm [thread:$0]  %s1749_s3, 128, %s3253_s1, [#allocation25]  }
 0x864   :  { %2702 = dma.done.wait [#allocation4], 128  }
 0x865   :  { %2703 = vsyncadd [#allocation4], 4294967168 }
 0x866   :  { %2704 = dma.done.wait [#allocation19], 256  }
 0x867   :  { %2705 = vsyncadd [#allocation19], 4294967040 }
 0x868   :  { %2706 = dma.done.wait [#allocation22], 256  }
 0x869   :  { %2707 = vsyncadd [#allocation22], 4294967040 }
 0x86a   :  { %2708 = dma.done.wait [#allocation25], 256  }
 0x86b   :  { %2709 = vsyncadd [#allocation25], 4294967040 }
 0x86c   :  { %1773 = vsyncpa [#allocation3], 1 }
 0x86d   :  { %1774 = vsyncpa [#allocation6], 1 }
 0x86e   :  { %1775 = vsyncpa [#allocation9], 1 }
 0x86f   :  { %1776 = vsyncpa [#allocation12], 1 }
 0x870   :  { %1777 = vsyncpa [#allocation15], 1 }
 0x871   :  { %1778 = vsyncpa [#allocation4], 1 }
 0x872   :  { %1779 = vsyncpa [#allocation19], 1 }
 0x873   :  { %1780 = vsyncpa [#allocation22], 1 }
 0x874   :  { %1781 = vsyncpa [#allocation25], 1 }

</bundles_post_ra>
